<compile_context>
chip_gen: v7x
topology: tpu7x:2x2x1
jax: 0.10.0
libtpu: 0.0.40
codegen_flags: <defaults>
</compile_context>

<pallas_src>
import jax
import jax.numpy as jnp
from jax.experimental import pallas as pl
from jax.experimental.pallas import tpu as pltpu

# ---------------- config ----------------
N_VOCAB = 1000
N_EMBED = 64          # D
N_HEAD = 4
HEAD_DIM = N_EMBED // N_HEAD
N_TOKENS = 8          # S
N_LAYERS = 12
BATCH = 2
LN_EPS = 1e-5         # torch.nn.LayerNorm default


# ---------------- in-kernel helpers ----------------
def _layernorm(x, gamma, beta):
    mean = jnp.mean(x, axis=-1, keepdims=True)
    var = jnp.mean((x - mean) ** 2, axis=-1, keepdims=True)
    return (x - mean) * jax.lax.rsqrt(var + LN_EPS) * gamma + beta


# ---------------- fused encoder kernel ----------------
def clip_encoder_kernel(x_ref,
                        ln1_g_ref, ln1_b_ref,
                        w_in_ref, b_in_ref,
                        w_out_ref, b_out_ref,
                        ln2_g_ref, ln2_b_ref,
                        w1_ref, b1_ref,
                        w2_ref, b2_ref,
                        lnf_g_ref, lnf_b_ref,
                        o_ref,
                        x_vmem):
    """One grid step == one CLIPLayer.  Weights are pipelined over the layer
    grid axis; the activation stays resident in VMEM scratch.  The final
    LayerNorm and the single HBM writeback are fused into the last step."""
    layer = pl.program_id(0)
    D, H, HD, B, S = N_EMBED, N_HEAD, HEAD_DIM, BATCH, N_TOKENS

    @pl.when(layer == 0)
    def _():
        x_vmem[...] = x_ref[...]

    x = x_vmem[...]                                           # (B*S, D) f32

    # ---------------- attention block ----------------
    residue = x
    xn = _layernorm(x, ln1_g_ref[0], ln1_b_ref[0])
    qkv = jnp.dot(xn, w_in_ref[0], preferred_element_type=jnp.float32) + b_in_ref[0]
    qkv3 = qkv.reshape(B, S, 3 * D)

    # head-batched layout (B*H, S, HD); leading index = h * B + b
    qh = jnp.concatenate(
        [qkv3[:, :, h * HD:(h + 1) * HD] for h in range(H)], axis=0)
    kh = jnp.concatenate(
        [qkv3[:, :, D + h * HD:D + (h + 1) * HD] for h in range(H)], axis=0)
    vh = jnp.concatenate(
        [qkv3[:, :, 2 * D + h * HD:2 * D + (h + 1) * HD] for h in range(H)], axis=0)

    scale = 1.0 / (HD ** 0.5)
    s = jnp.einsum("bqd,bkd->bqk", qh, kh,
                   preferred_element_type=jnp.float32) * scale
    # TODO(synk): the real CLIP text encoder applies a causal mask here; the
    # provided module/reference omit it, so we match that behaviour.
    s = s - jnp.max(s, axis=-1, keepdims=True)
    p = jnp.exp(s)
    p = p * pl.reciprocal(jnp.sum(p, axis=-1, keepdims=True), approx=True)
    o = jnp.einsum("bqk,bkd->bqd", p, vh,
                   preferred_element_type=jnp.float32)        # (B*H, S, HD)

    attn = jnp.concatenate([o[h * B:(h + 1) * B] for h in range(H)], axis=-1)
    attn = attn.reshape(B * S, D)
    attn = jnp.dot(attn, w_out_ref[0],
                   preferred_element_type=jnp.float32) + b_out_ref[0]
    x = attn + residue

    # ---------------- MLP block (quickGELU) ----------------
    residue = x
    xn = _layernorm(x, ln2_g_ref[0], ln2_b_ref[0])
    h1 = jnp.dot(xn, w1_ref[0], preferred_element_type=jnp.float32) + b1_ref[0]
    h1 = h1 * jax.nn.sigmoid(1.702 * h1)
    x = jnp.dot(h1, w2_ref[0], preferred_element_type=jnp.float32) + b2_ref[0] + residue

    x_vmem[...] = x

    # fused final LayerNorm + single HBM writeback on the last layer
    @pl.when(layer == pl.num_programs(0) - 1)
    def _():
        o_ref[...] = _layernorm(x, lnf_g_ref[...], lnf_b_ref[...])


# ---------------- wrapper ----------------
def _stacked_spec(block_shape):
    """Weight stacked along a leading layer axis; block picks layer `l`."""
    nd = len(block_shape)
    return pl.BlockSpec((1,) + tuple(block_shape),
                        lambda l, _nd=nd: (l,) + (0,) * _nd)


def _const_spec(block_shape):
    """Full-array block, constant index (loaded/stored once)."""
    nd = len(block_shape)
    return pl.BlockSpec(tuple(block_shape), lambda l, _nd=nd: (0,) * _nd)


def clip_encoder(x, params):
    """x: (B, S, D) f32 -> (B, S, D) f32.  All layers + final LN in one call."""
    B, S, D = x.shape
    BS = B * S
    x2 = x.reshape(BS, D)  # free layout plumbing in the wrapper

    out = pl.pallas_call(
        clip_encoder_kernel,
        out_shape=jax.ShapeDtypeStruct((BS, D), jnp.float32),
        grid=(N_LAYERS,),
        in_specs=[
            _const_spec((BS, D)),                                   # x (loaded once)
            _stacked_spec((1, D)), _stacked_spec((1, D)),           # ln1 gamma/beta
            _stacked_spec((D, 3 * D)), _stacked_spec((1, 3 * D)),   # in_proj W/b
            _stacked_spec((D, D)), _stacked_spec((1, D)),           # out_proj W/b
            _stacked_spec((1, D)), _stacked_spec((1, D)),           # ln2 gamma/beta
            _stacked_spec((D, 4 * D)), _stacked_spec((1, 4 * D)),   # linear1 W/b
            _stacked_spec((4 * D, D)), _stacked_spec((1, D)),       # linear2 W/b
            _const_spec((1, D)), _const_spec((1, D)),               # final LN gamma/beta
        ],
        out_specs=_const_spec((BS, D)),
        scratch_shapes=[pltpu.VMEM((BS, D), jnp.float32)],
        compiler_params=pltpu.CompilerParams(
            dimension_semantics=("arbitrary",),       # layers are sequential (VMEM carry)
            vmem_limit_bytes=32 * 1024 * 1024),
    )(x2,
      params["ln1_g"], params["ln1_b"],
      params["w_in"], params["b_in"],
      params["w_out"], params["b_out"],
      params["ln2_g"], params["ln2_b"],
      params["w1"], params["b1"],
      params["w2"], params["b2"],
      params["ln_f_g"], params["ln_f_b"])
    return out.reshape(B, S, D)


# ---------------- parameters ----------------
def init_params(key):
    D, L = N_EMBED, N_LAYERS
    ks = jax.random.split(key, 10)

    def nrm(k, shape, scale=0.02):
        return scale * jax.random.normal(k, shape, jnp.float32)

    return {
        "token_emb": nrm(ks[0], (N_VOCAB, D)),
        "pos_emb": nrm(ks[1], (N_TOKENS, D)),
        # per-layer params stacked along a leading layer axis (weights (in,out))
        "ln1_g": jnp.ones((L, 1, D), jnp.float32),
        "ln1_b": jnp.zeros((L, 1, D), jnp.float32),
        "w_in": nrm(ks[2], (L, D, 3 * D)),
        "b_in": nrm(ks[3], (L, 1, 3 * D), 0.01),
        "w_out": nrm(ks[4], (L, D, D)),
        "b_out": nrm(ks[5], (L, 1, D), 0.01),
        "ln2_g": jnp.ones((L, 1, D), jnp.float32),
        "ln2_b": jnp.zeros((L, 1, D), jnp.float32),
        "w1": nrm(ks[6], (L, D, 4 * D)),
        "b1": nrm(ks[7], (L, 1, 4 * D), 0.01),
        "w2": nrm(ks[8], (L, 4 * D, D)),
        "b2": nrm(ks[9], (L, 1, D), 0.01),
        "ln_f_g": jnp.ones((1, D), jnp.float32),
        "ln_f_b": jnp.zeros((1, D), jnp.float32),
    }


# ---------------- forward ----------------
def clip_forward(tokens, params):
    tokens = tokens.astype(jnp.int32)
    # CLIPEmbedding: token-embedding gather + positional add (XLA glue; the
    # gather has no cheap Pallas win at this size).
    x = jnp.take(params["token_emb"], tokens, axis=0) + params["pos_emb"][None, :, :]
    return clip_encoder(x.astype(jnp.float32), params)


# pure-JAX reference (same math) for a sanity check.
def _ref_forward(tokens, params):
    def ln(x, g, b):
        m = jnp.mean(x, -1, keepdims=True)
        v = jnp.mean((x - m) ** 2, -1, keepdims=True)
        return (x - m) / jnp.sqrt(v + LN_EPS) * g + b

    x = jnp.take(params["token_emb"], tokens.astype(jnp.int32), axis=0) + params["pos_emb"][None]
    for l in range(N_LAYERS):
        r = x
        h = ln(x, params["ln1_g"][l], params["ln1_b"][l])
        qkv = h @ params["w_in"][l] + params["b_in"][l]
        q, k, v = jnp.split(qkv, 3, axis=-1)
        B, S, D = q.shape
        q = q.reshape(B, S, N_HEAD, HEAD_DIM).transpose(0, 2, 1, 3)
        k = k.reshape(B, S, N_HEAD, HEAD_DIM).transpose(0, 2, 1, 3)
        v = v.reshape(B, S, N_HEAD, HEAD_DIM).transpose(0, 2, 1, 3)
        s = jnp.einsum("bhqd,bhkd->bhqk", q, k) / (HEAD_DIM ** 0.5)
        a = jax.nn.softmax(s, axis=-1)
        o = jnp.einsum("bhqk,bhkd->bhqd", a, v).transpose(0, 2, 1, 3).reshape(B, S, D)
        x = o @ params["w_out"][l] + params["b_out"][l] + r
        r = x
        h = ln(x, params["ln2_g"][l], params["ln2_b"][l])
        h = h @ params["w1"][l] + params["b1"][l]
        h = h * jax.nn.sigmoid(1.702 * h)
        x = h @ params["w2"][l] + params["b2"][l] + r
    return ln(x, params["ln_f_g"], params["ln_f_b"])


if __name__ == "__main__":
    key = jax.random.PRNGKey(0)
    pkey, tkey = jax.random.split(key)
    params = init_params(pkey)
    tokens = jax.random.randint(tkey, (BATCH, N_TOKENS), 0, N_VOCAB, dtype=jnp.int32)

    out = jax.block_until_ready(clip_forward(tokens, params))
    assert out.shape == (BATCH, N_TOKENS, N_EMBED) and out.dtype == jnp.float32

    ref = jax.block_until_ready(_ref_forward(tokens, params))
    assert jnp.allclose(out, ref, atol=2e-2, rtol=2e-2), "mismatch vs JAX reference"

    print("KERNEL_OK")
</pallas_src>

<mosaic_0001>
module attributes {stable_mosaic.version = 11 : i64} {
  func.func @clip_encoder_kernel(%arg0: i32, %arg1: memref<16x64xf32, #tpu.memory_space<vmem>>, %arg2: memref<1x1x64xf32, #tpu.memory_space<vmem>>, %arg3: memref<1x1x64xf32, #tpu.memory_space<vmem>>, %arg4: memref<1x64x192xf32, #tpu.memory_space<vmem>>, %arg5: memref<1x1x192xf32, #tpu.memory_space<vmem>>, %arg6: memref<1x64x64xf32, #tpu.memory_space<vmem>>, %arg7: memref<1x1x64xf32, #tpu.memory_space<vmem>>, %arg8: memref<1x1x64xf32, #tpu.memory_space<vmem>>, %arg9: memref<1x1x64xf32, #tpu.memory_space<vmem>>, %arg10: memref<1x64x256xf32, #tpu.memory_space<vmem>>, %arg11: memref<1x1x256xf32, #tpu.memory_space<vmem>>, %arg12: memref<1x256x64xf32, #tpu.memory_space<vmem>>, %arg13: memref<1x1x64xf32, #tpu.memory_space<vmem>>, %arg14: memref<1x64xf32, #tpu.memory_space<vmem>>, %arg15: memref<1x64xf32, #tpu.memory_space<vmem>>, %arg16: memref<16x64xf32, #tpu.memory_space<vmem>>, %arg17: memref<16x64xf32, #tpu.memory_space<vmem>>) attributes {dimension_semantics = [#tpu.dimension_semantics<arbitrary>], iteration_bounds = array<i64: 12>, scalar_prefetch = 0 : i64, scratch_operands = 1 : i64, tpu.core_type = #tpu.core_type<tc>, window_params = [{pipeline_mode = #tpu.pipeline_mode<synchronous>, transform_indices = @transform_0, window_bounds = array<i64: 16, 64>}, {transform_indices = @transform_1, window_bounds = array<i64: 1, 1, 64>}, {transform_indices = @transform_2, window_bounds = array<i64: 1, 1, 64>}, {transform_indices = @transform_3, window_bounds = array<i64: 1, 64, 192>}, {transform_indices = @transform_4, window_bounds = array<i64: 1, 1, 192>}, {transform_indices = @transform_5, window_bounds = array<i64: 1, 64, 64>}, {transform_indices = @transform_6, window_bounds = array<i64: 1, 1, 64>}, {transform_indices = @transform_7, window_bounds = array<i64: 1, 1, 64>}, {transform_indices = @transform_8, window_bounds = array<i64: 1, 1, 64>}, {transform_indices = @transform_9, window_bounds = array<i64: 1, 64, 256>}, {transform_indices = @transform_10, window_bounds = array<i64: 1, 1, 256>}, {transform_indices = @transform_11, window_bounds = array<i64: 1, 256, 64>}, {transform_indices = @transform_12, window_bounds = array<i64: 1, 1, 64>}, {pipeline_mode = #tpu.pipeline_mode<synchronous>, transform_indices = @transform_13, window_bounds = array<i64: 1, 64>}, {pipeline_mode = #tpu.pipeline_mode<synchronous>, transform_indices = @transform_14, window_bounds = array<i64: 1, 64>}, {pipeline_mode = #tpu.pipeline_mode<synchronous>, transform_indices = @transform_15, window_bounds = array<i64: 16, 64>}]} {
    %c0_i32 = arith.constant 0 : i32
    %0 = arith.cmpi eq, %arg0, %c0_i32 : i32
    %1 = arith.extui %0 : i1 to i32
    %c0_i32_0 = arith.constant 0 : i32
    %2 = arith.cmpi ne, %1, %c0_i32_0 : i32
    scf.if %2 {
      %c0_61 = arith.constant 0 : index
      %c0_62 = arith.constant 0 : index
      %134 = vector.load %arg1[%c0_61, %c0_62] : memref<16x64xf32, #tpu.memory_space<vmem>>, vector<16x64xf32>
      %c0_63 = arith.constant 0 : index
      %c0_64 = arith.constant 0 : index
      %135 = vector.load %arg17[%c0_63, %c0_64] : memref<16x64xf32, #tpu.memory_space<vmem>>, vector<16x64xf32>
      tpu.vector_store %arg17[%c0_63, %c0_64], %134 {strides = array<i32>} : memref<16x64xf32, #tpu.memory_space<vmem>>, vector<16x64xf32>,
    } else {
    }
    %c0 = arith.constant 0 : index
    %c0_1 = arith.constant 0 : index
    %3 = vector.load %arg17[%c0, %c0_1] : memref<16x64xf32, #tpu.memory_space<vmem>>, vector<16x64xf32>
    %c0_2 = arith.constant 0 : index
    %c0_3 = arith.constant 0 : index
    %c0_4 = arith.constant 0 : index
    %4 = vector.load %arg2[%c0_2, %c0_3, %c0_4] : memref<1x1x64xf32, #tpu.memory_space<vmem>>, vector<1x1x64xf32>
    %5 = vector.shape_cast %4 : vector<1x1x64xf32> to vector<1x64xf32>
    %c0_5 = arith.constant 0 : index
    %c0_6 = arith.constant 0 : index
    %c0_7 = arith.constant 0 : index
    %6 = vector.load %arg3[%c0_5, %c0_6, %c0_7] : memref<1x1x64xf32, #tpu.memory_space<vmem>>, vector<1x1x64xf32>
    %7 = vector.shape_cast %6 : vector<1x1x64xf32> to vector<1x64xf32>
    %cst = arith.constant dense<0.000000e+00> : vector<16xf32>
    %8 = vector.multi_reduction <add>, %3, %cst [1] : vector<16x64xf32> to vector<16xf32>
    %9 = vector.shape_cast %8 : vector<16xf32> to vector<16x1xf32>
    %cst_8 = arith.constant 6.400000e+01 : f32
    %10 = vector.broadcast %cst_8 : f32 to vector<16x1xf32>
    %11 = arith.divf %9, %10 : vector<16x1xf32>
    %12 = vector.broadcast %11 : vector<16x1xf32> to vector<16x64xf32>
    %13 = arith.subf %3, %12 : vector<16x64xf32>
    %14 = arith.mulf %13, %13 : vector<16x64xf32>
    %cst_9 = arith.constant dense<0.000000e+00> : vector<16xf32>
    %15 = vector.multi_reduction <add>, %14, %cst_9 [1] : vector<16x64xf32> to vector<16xf32>
    %16 = vector.shape_cast %15 : vector<16xf32> to vector<16x1xf32>
    %cst_10 = arith.constant 6.400000e+01 : f32
    %17 = vector.broadcast %cst_10 : f32 to vector<16x1xf32>
    %18 = arith.divf %16, %17 : vector<16x1xf32>
    %19 = vector.broadcast %11 : vector<16x1xf32> to vector<16x64xf32>
    %20 = arith.subf %3, %19 : vector<16x64xf32>
    %cst_11 = arith.constant 9.99999974E-6 : f32
    %21 = vector.broadcast %cst_11 : f32 to vector<16x1xf32>
    %22 = arith.addf %18, %21 : vector<16x1xf32>
    %23 = math.rsqrt %22 : vector<16x1xf32>
    %24 = vector.broadcast %23 : vector<16x1xf32> to vector<16x64xf32>
    %25 = arith.mulf %20, %24 : vector<16x64xf32>
    %26 = vector.broadcast %5 : vector<1x64xf32> to vector<16x64xf32>
    %27 = arith.mulf %25, %26 : vector<16x64xf32>
    %28 = vector.broadcast %7 : vector<1x64xf32> to vector<16x64xf32>
    %29 = arith.addf %27, %28 : vector<16x64xf32>
    %c0_12 = arith.constant 0 : index
    %c0_13 = arith.constant 0 : index
    %c0_14 = arith.constant 0 : index
    %30 = vector.load %arg4[%c0_12, %c0_13, %c0_14] : memref<1x64x192xf32, #tpu.memory_space<vmem>>, vector<1x64x192xf32>
    %31 = vector.shape_cast %30 : vector<1x64x192xf32> to vector<64x192xf32>
    %cst_15 = arith.constant dense<0.000000e+00> : vector<16x192xf32>
    %32 = tpu.matmul %29, %31, %cst_15 {dimension_numbers = #tpu.dot_dimension_numbers<[1], [0], [0], [1], [0, 0, 1, 1], [], []>} : vector<16x64xf32>, vector<64x192xf32>, vector<16x192xf32> -> vector<16x192xf32>
    %c0_16 = arith.constant 0 : index
    %c0_17 = arith.constant 0 : index
    %c0_18 = arith.constant 0 : index
    %33 = vector.load %arg5[%c0_16, %c0_17, %c0_18] : memref<1x1x192xf32, #tpu.memory_space<vmem>>, vector<1x1x192xf32>
    %34 = vector.shape_cast %33 : vector<1x1x192xf32> to vector<1x192xf32>
    %35 = vector.broadcast %34 : vector<1x192xf32> to vector<16x192xf32>
    %36 = arith.addf %32, %35 : vector<16x192xf32>
    %37 = vector.shape_cast %36 : vector<16x192xf32> to vector<2x8x192xf32>
    %38 = vector.extract_strided_slice %37 {offsets = [0, 0, 0], sizes = [2, 8, 16], strides = [1, 1, 1]} : vector<2x8x192xf32> to vector<2x8x16xf32>
    %39 = vector.extract_strided_slice %37 {offsets = [0, 0, 16], sizes = [2, 8, 16], strides = [1, 1, 1]} : vector<2x8x192xf32> to vector<2x8x16xf32>
    %40 = vector.extract_strided_slice %37 {offsets = [0, 0, 32], sizes = [2, 8, 16], strides = [1, 1, 1]} : vector<2x8x192xf32> to vector<2x8x16xf32>
    %41 = vector.extract_strided_slice %37 {offsets = [0, 0, 48], sizes = [2, 8, 16], strides = [1, 1, 1]} : vector<2x8x192xf32> to vector<2x8x16xf32>
    %42 = tpu.concatenate %38, %39, %40, %41 in 0 : vector<2x8x16xf32>, vector<2x8x16xf32>, vector<2x8x16xf32>, vector<2x8x16xf32> -> vector<8x8x16xf32>
    %43 = vector.extract_strided_slice %37 {offsets = [0, 0, 64], sizes = [2, 8, 16], strides = [1, 1, 1]} : vector<2x8x192xf32> to vector<2x8x16xf32>
    %44 = vector.extract_strided_slice %37 {offsets = [0, 0, 80], sizes = [2, 8, 16], strides = [1, 1, 1]} : vector<2x8x192xf32> to vector<2x8x16xf32>
    %45 = vector.extract_strided_slice %37 {offsets = [0, 0, 96], sizes = [2, 8, 16], strides = [1, 1, 1]} : vector<2x8x192xf32> to vector<2x8x16xf32>
    %46 = vector.extract_strided_slice %37 {offsets = [0, 0, 112], sizes = [2, 8, 16], strides = [1, 1, 1]} : vector<2x8x192xf32> to vector<2x8x16xf32>
    %47 = tpu.concatenate %43, %44, %45, %46 in 0 : vector<2x8x16xf32>, vector<2x8x16xf32>, vector<2x8x16xf32>, vector<2x8x16xf32> -> vector<8x8x16xf32>
    %48 = vector.extract_strided_slice %37 {offsets = [0, 0, 128], sizes = [2, 8, 16], strides = [1, 1, 1]} : vector<2x8x192xf32> to vector<2x8x16xf32>
    %49 = vector.extract_strided_slice %37 {offsets = [0, 0, 144], sizes = [2, 8, 16], strides = [1, 1, 1]} : vector<2x8x192xf32> to vector<2x8x16xf32>
    %50 = vector.extract_strided_slice %37 {offsets = [0, 0, 160], sizes = [2, 8, 16], strides = [1, 1, 1]} : vector<2x8x192xf32> to vector<2x8x16xf32>
    %51 = vector.extract_strided_slice %37 {offsets = [0, 0, 176], sizes = [2, 8, 16], strides = [1, 1, 1]} : vector<2x8x192xf32> to vector<2x8x16xf32>
    %52 = tpu.concatenate %48, %49, %50, %51 in 0 : vector<2x8x16xf32>, vector<2x8x16xf32>, vector<2x8x16xf32>, vector<2x8x16xf32> -> vector<8x8x16xf32>
    "tpu.trace_start"() <{level = 10 : i32, message = "bqd,bkd->bqk"}> : () -> ()
    %cst_19 = arith.constant dense<0.000000e+00> : vector<8x8x8xf32>
    %53 = tpu.matmul %42, %47, %cst_19 {dimension_numbers = #tpu.dot_dimension_numbers<[2], [2], [1], [1], [0, 0, 0, 1, 1, 1], [0], [0]>} : vector<8x8x16xf32>, vector<8x8x16xf32>, vector<8x8x8xf32> -> vector<8x8x8xf32>
    "tpu.trace_stop"() : () -> ()
    %cst_20 = arith.constant 2.500000e-01 : f32
    %54 = vector.broadcast %cst_20 : f32 to vector<8x8x8xf32>
    %55 = arith.mulf %53, %54 : vector<8x8x8xf32>
    %cst_21 = arith.constant dense<0xFF800000> : vector<8x8xf32>
    %56 = vector.multi_reduction <maximumf>, %55, %cst_21 [2] : vector<8x8x8xf32> to vector<8x8xf32>
    %57 = vector.shape_cast %56 : vector<8x8xf32> to vector<8x8x1xf32>
    %58 = vector.broadcast %57 : vector<8x8x1xf32> to vector<8x8x8xf32>
    %59 = arith.subf %55, %58 : vector<8x8x8xf32>
    %60 = math.exp %59 : vector<8x8x8xf32>
    %cst_22 = arith.constant dense<0.000000e+00> : vector<8x8xf32>
    %61 = vector.multi_reduction <add>, %60, %cst_22 [2] : vector<8x8x8xf32> to vector<8x8xf32>
    %62 = vector.shape_cast %61 : vector<8x8xf32> to vector<8x8x1xf32>
    %63 = tpu.reciprocal %62 {approx = true} : vector<8x8x1xf32> -> vector<8x8x1xf32>
    %64 = vector.broadcast %63 : vector<8x8x1xf32> to vector<8x8x8xf32>
    %65 = arith.mulf %60, %64 : vector<8x8x8xf32>
    "tpu.trace_start"() <{level = 10 : i32, message = "bqk,bkd->bqd"}> : () -> ()
    %cst_23 = arith.constant dense<0.000000e+00> : vector<8x8x16xf32>
    %66 = tpu.matmul %65, %52, %cst_23 {dimension_numbers = #tpu.dot_dimension_numbers<[2], [1], [1], [2], [0, 0, 0, 1, 1, 2], [0], [0]>} : vector<8x8x8xf32>, vector<8x8x16xf32>, vector<8x8x16xf32> -> vector<8x8x16xf32>
    "tpu.trace_stop"() : () -> ()
    %67 = vector.extract_strided_slice %66 {offsets = [0, 0, 0], sizes = [2, 8, 16], strides = [1, 1, 1]} : vector<8x8x16xf32> to vector<2x8x16xf32>
    %68 = vector.extract_strided_slice %66 {offsets = [2, 0, 0], sizes = [2, 8, 16], strides = [1, 1, 1]} : vector<8x8x16xf32> to vector<2x8x16xf32>
    %69 = vector.extract_strided_slice %66 {offsets = [4, 0, 0], sizes = [2, 8, 16], strides = [1, 1, 1]} : vector<8x8x16xf32> to vector<2x8x16xf32>
    %70 = vector.extract_strided_slice %66 {offsets = [6, 0, 0], sizes = [2, 8, 16], strides = [1, 1, 1]} : vector<8x8x16xf32> to vector<2x8x16xf32>
    %71 = tpu.concatenate %67, %68, %69, %70 in 2 : vector<2x8x16xf32>, vector<2x8x16xf32>, vector<2x8x16xf32>, vector<2x8x16xf32> -> vector<2x8x64xf32>
    %72 = vector.shape_cast %71 : vector<2x8x64xf32> to vector<16x64xf32>
    %c0_24 = arith.constant 0 : index
    %c0_25 = arith.constant 0 : index
    %c0_26 = arith.constant 0 : index
    %73 = vector.load %arg6[%c0_24, %c0_25, %c0_26] : memref<1x64x64xf32, #tpu.memory_space<vmem>>, vector<1x64x64xf32>
    %74 = vector.shape_cast %73 : vector<1x64x64xf32> to vector<64x64xf32>
    %cst_27 = arith.constant dense<0.000000e+00> : vector<16x64xf32>
    %75 = tpu.matmul %72, %74, %cst_27 {dimension_numbers = #tpu.dot_dimension_numbers<[1], [0], [0], [1], [0, 0, 1, 1], [], []>} : vector<16x64xf32>, vector<64x64xf32>, vector<16x64xf32> -> vector<16x64xf32>
    %c0_28 = arith.constant 0 : index
    %c0_29 = arith.constant 0 : index
    %c0_30 = arith.constant 0 : index
    %76 = vector.load %arg7[%c0_28, %c0_29, %c0_30] : memref<1x1x64xf32, #tpu.memory_space<vmem>>, vector<1x1x64xf32>
    %77 = vector.shape_cast %76 : vector<1x1x64xf32> to vector<1x64xf32>
    %78 = vector.broadcast %77 : vector<1x64xf32> to vector<16x64xf32>
    %79 = arith.addf %75, %78 : vector<16x64xf32>
    %80 = arith.addf %79, %3 : vector<16x64xf32>
    %c0_31 = arith.constant 0 : index
    %c0_32 = arith.constant 0 : index
    %c0_33 = arith.constant 0 : index
    %81 = vector.load %arg8[%c0_31, %c0_32, %c0_33] : memref<1x1x64xf32, #tpu.memory_space<vmem>>, vector<1x1x64xf32>
    %82 = vector.shape_cast %81 : vector<1x1x64xf32> to vector<1x64xf32>
    %c0_34 = arith.constant 0 : index
    %c0_35 = arith.constant 0 : index
    %c0_36 = arith.constant 0 : index
    %83 = vector.load %arg9[%c0_34, %c0_35, %c0_36] : memref<1x1x64xf32, #tpu.memory_space<vmem>>, vector<1x1x64xf32>
    %84 = vector.shape_cast %83 : vector<1x1x64xf32> to vector<1x64xf32>
    %cst_37 = arith.constant dense<0.000000e+00> : vector<16xf32>
    %85 = vector.multi_reduction <add>, %80, %cst_37 [1] : vector<16x64xf32> to vector<16xf32>
    %86 = vector.shape_cast %85 : vector<16xf32> to vector<16x1xf32>
    %cst_38 = arith.constant 6.400000e+01 : f32
    %87 = vector.broadcast %cst_38 : f32 to vector<16x1xf32>
    %88 = arith.divf %86, %87 : vector<16x1xf32>
    %89 = vector.broadcast %88 : vector<16x1xf32> to vector<16x64xf32>
    %90 = arith.subf %80, %89 : vector<16x64xf32>
    %91 = arith.mulf %90, %90 : vector<16x64xf32>
    %cst_39 = arith.constant dense<0.000000e+00> : vector<16xf32>
    %92 = vector.multi_reduction <add>, %91, %cst_39 [1] : vector<16x64xf32> to vector<16xf32>
    %93 = vector.shape_cast %92 : vector<16xf32> to vector<16x1xf32>
    %cst_40 = arith.constant 6.400000e+01 : f32
    %94 = vector.broadcast %cst_40 : f32 to vector<16x1xf32>
    %95 = arith.divf %93, %94 : vector<16x1xf32>
    %96 = vector.broadcast %88 : vector<16x1xf32> to vector<16x64xf32>
    %97 = arith.subf %80, %96 : vector<16x64xf32>
    %cst_41 = arith.constant 9.99999974E-6 : f32
    %98 = vector.broadcast %cst_41 : f32 to vector<16x1xf32>
    %99 = arith.addf %95, %98 : vector<16x1xf32>
    %100 = math.rsqrt %99 : vector<16x1xf32>
    %101 = vector.broadcast %100 : vector<16x1xf32> to vector<16x64xf32>
    %102 = arith.mulf %97, %101 : vector<16x64xf32>
    %103 = vector.broadcast %82 : vector<1x64xf32> to vector<16x64xf32>
    %104 = arith.mulf %102, %103 : vector<16x64xf32>
    %105 = vector.broadcast %84 : vector<1x64xf32> to vector<16x64xf32>
    %106 = arith.addf %104, %105 : vector<16x64xf32>
    %c0_42 = arith.constant 0 : index
    %c0_43 = arith.constant 0 : index
    %c0_44 = arith.constant 0 : index
    %107 = vector.load %arg10[%c0_42, %c0_43, %c0_44] : memref<1x64x256xf32, #tpu.memory_space<vmem>>, vector<1x64x256xf32>
    %108 = vector.shape_cast %107 : vector<1x64x256xf32> to vector<64x256xf32>
    %cst_45 = arith.constant dense<0.000000e+00> : vector<16x256xf32>
    %109 = tpu.matmul %106, %108, %cst_45 {dimension_numbers = #tpu.dot_dimension_numbers<[1], [0], [0], [1], [0, 0, 1, 1], [], []>} : vector<16x64xf32>, vector<64x256xf32>, vector<16x256xf32> -> vector<16x256xf32>
    %c0_46 = arith.constant 0 : index
    %c0_47 = arith.constant 0 : index
    %c0_48 = arith.constant 0 : index
    %110 = vector.load %arg11[%c0_46, %c0_47, %c0_48] : memref<1x1x256xf32, #tpu.memory_space<vmem>>, vector<1x1x256xf32>
    %111 = vector.shape_cast %110 : vector<1x1x256xf32> to vector<1x256xf32>
    %112 = vector.broadcast %111 : vector<1x256xf32> to vector<16x256xf32>
    %113 = arith.addf %109, %112 : vector<16x256xf32>
    %cst_49 = arith.constant 1.702000e+00 : f32
    %114 = vector.broadcast %cst_49 : f32 to vector<16x256xf32>
    %115 = arith.mulf %114, %113 : vector<16x256xf32>
    %116 = arith.negf %115 : vector<16x256xf32>
    %117 = math.exp %116 : vector<16x256xf32>
    %cst_50 = arith.constant 1.000000e+00 : f32
    %118 = vector.broadcast %cst_50 : f32 to vector<16x256xf32>
    %119 = arith.addf %118, %117 : vector<16x256xf32>
    %120 = arith.divf %118, %119 : vector<16x256xf32>
    %121 = arith.mulf %113, %120 : vector<16x256xf32>
    %c0_51 = arith.constant 0 : index
    %c0_52 = arith.constant 0 : index
    %c0_53 = arith.constant 0 : index
    %122 = vector.load %arg12[%c0_51, %c0_52, %c0_53] : memref<1x256x64xf32, #tpu.memory_space<vmem>>, vector<1x256x64xf32>
    %123 = vector.shape_cast %122 : vector<1x256x64xf32> to vector<256x64xf32>
    %cst_54 = arith.constant dense<0.000000e+00> : vector<16x64xf32>
    %124 = tpu.matmul %121, %123, %cst_54 {dimension_numbers = #tpu.dot_dimension_numbers<[1], [0], [0], [1], [0, 0, 1, 1], [], []>} : vector<16x256xf32>, vector<256x64xf32>, vector<16x64xf32> -> vector<16x64xf32>
    %c0_55 = arith.constant 0 : index
    %c0_56 = arith.constant 0 : index
    %c0_57 = arith.constant 0 : index
    %125 = vector.load %arg13[%c0_55, %c0_56, %c0_57] : memref<1x1x64xf32, #tpu.memory_space<vmem>>, vector<1x1x64xf32>
    %126 = vector.shape_cast %125 : vector<1x1x64xf32> to vector<1x64xf32>
    %127 = vector.broadcast %126 : vector<1x64xf32> to vector<16x64xf32>
    %128 = arith.addf %124, %127 : vector<16x64xf32>
    %129 = arith.addf %128, %80 : vector<16x64xf32>
    %c0_58 = arith.constant 0 : index
    %c0_59 = arith.constant 0 : index
    %130 = vector.load %arg17[%c0_58, %c0_59] : memref<16x64xf32, #tpu.memory_space<vmem>>, vector<16x64xf32>
    tpu.vector_store %arg17[%c0_58, %c0_59], %129 {strides = array<i32>} : memref<16x64xf32, #tpu.memory_space<vmem>>, vector<16x64xf32>,
    %c11_i32 = arith.constant 11 : i32
    %131 = arith.cmpi eq, %arg0, %c11_i32 : i32
    %132 = arith.extui %131 : i1 to i32
    %c0_i32_60 = arith.constant 0 : i32
    %133 = arith.cmpi ne, %132, %c0_i32_60 : i32
    scf.if %133 {
      %c0_61 = arith.constant 0 : index
      %c0_62 = arith.constant 0 : index
      %134 = vector.load %arg14[%c0_61, %c0_62] : memref<1x64xf32, #tpu.memory_space<vmem>>, vector<1x64xf32>
      %c0_63 = arith.constant 0 : index
      %c0_64 = arith.constant 0 : index
      %135 = vector.load %arg15[%c0_63, %c0_64] : memref<1x64xf32, #tpu.memory_space<vmem>>, vector<1x64xf32>
      %cst_65 = arith.constant dense<0.000000e+00> : vector<16xf32>
      %136 = vector.multi_reduction <add>, %129, %cst_65 [1] : vector<16x64xf32> to vector<16xf32>
      %137 = vector.shape_cast %136 : vector<16xf32> to vector<16x1xf32>
      %cst_66 = arith.constant 6.400000e+01 : f32
      %138 = vector.broadcast %cst_66 : f32 to vector<16x1xf32>
      %139 = arith.divf %137, %138 : vector<16x1xf32>
      %140 = vector.broadcast %139 : vector<16x1xf32> to vector<16x64xf32>
      %141 = arith.subf %129, %140 : vector<16x64xf32>
      %142 = arith.mulf %141, %141 : vector<16x64xf32>
      %cst_67 = arith.constant dense<0.000000e+00> : vector<16xf32>
      %143 = vector.multi_reduction <add>, %142, %cst_67 [1] : vector<16x64xf32> to vector<16xf32>
      %144 = vector.shape_cast %143 : vector<16xf32> to vector<16x1xf32>
      %cst_68 = arith.constant 6.400000e+01 : f32
      %145 = vector.broadcast %cst_68 : f32 to vector<16x1xf32>
      %146 = arith.divf %144, %145 : vector<16x1xf32>
      %147 = vector.broadcast %139 : vector<16x1xf32> to vector<16x64xf32>
      %148 = arith.subf %129, %147 : vector<16x64xf32>
      %cst_69 = arith.constant 9.99999974E-6 : f32
      %149 = vector.broadcast %cst_69 : f32 to vector<16x1xf32>
      %150 = arith.addf %146, %149 : vector<16x1xf32>
      %151 = math.rsqrt %150 : vector<16x1xf32>
      %152 = vector.broadcast %151 : vector<16x1xf32> to vector<16x64xf32>
      %153 = arith.mulf %148, %152 : vector<16x64xf32>
      %154 = vector.broadcast %134 : vector<1x64xf32> to vector<16x64xf32>
      %155 = arith.mulf %153, %154 : vector<16x64xf32>
      %156 = vector.broadcast %135 : vector<1x64xf32> to vector<16x64xf32>
      %157 = arith.addf %155, %156 : vector<16x64xf32>
      %c0_70 = arith.constant 0 : index
      %c0_71 = arith.constant 0 : index
      %158 = vector.load %arg16[%c0_70, %c0_71] : memref<16x64xf32, #tpu.memory_space<vmem>>, vector<16x64xf32>
      tpu.vector_store %arg16[%c0_70, %c0_71], %157 {strides = array<i32>} : memref<16x64xf32, #tpu.memory_space<vmem>>, vector<16x64xf32>,
    } else {
    }
    return
  }
  func.func @transform_0(%arg0: i32) -> (i32, i32) {
    %c0_i32 = arith.constant 0 : i32
    %c0_i32_0 = arith.constant 0 : i32
    %c0_i32_1 = arith.constant 0 : i32
    return %c0_i32, %c0_i32_0 : i32, i32
  }
  func.func @transform_1(%arg0: i32) -> (i32, i32, i32) {
    %c0_i32 = arith.constant 0 : i32
    %c0_i32_0 = arith.constant 0 : i32
    %c0_i32_1 = arith.constant 0 : i32
    return %arg0, %c0_i32, %c0_i32_0 : i32, i32, i32
  }
  func.func @transform_2(%arg0: i32) -> (i32, i32, i32) {
    %c0_i32 = arith.constant 0 : i32
    %c0_i32_0 = arith.constant 0 : i32
    %c0_i32_1 = arith.constant 0 : i32
    return %arg0, %c0_i32, %c0_i32_0 : i32, i32, i32
  }
  func.func @transform_3(%arg0: i32) -> (i32, i32, i32) {
    %c0_i32 = arith.constant 0 : i32
    %c0_i32_0 = arith.constant 0 : i32
    %c0_i32_1 = arith.constant 0 : i32
    return %arg0, %c0_i32, %c0_i32_0 : i32, i32, i32
  }
  func.func @transform_4(%arg0: i32) -> (i32, i32, i32) {
    %c0_i32 = arith.constant 0 : i32
    %c0_i32_0 = arith.constant 0 : i32
    %c0_i32_1 = arith.constant 0 : i32
    return %arg0, %c0_i32, %c0_i32_0 : i32, i32, i32
  }
  func.func @transform_5(%arg0: i32) -> (i32, i32, i32) {
    %c0_i32 = arith.constant 0 : i32
    %c0_i32_0 = arith.constant 0 : i32
    %c0_i32_1 = arith.constant 0 : i32
    return %arg0, %c0_i32, %c0_i32_0 : i32, i32, i32
  }
  func.func @transform_6(%arg0: i32) -> (i32, i32, i32) {
    %c0_i32 = arith.constant 0 : i32
    %c0_i32_0 = arith.constant 0 : i32
    %c0_i32_1 = arith.constant 0 : i32
    return %arg0, %c0_i32, %c0_i32_0 : i32, i32, i32
  }
  func.func @transform_7(%arg0: i32) -> (i32, i32, i32) {
    %c0_i32 = arith.constant 0 : i32
    %c0_i32_0 = arith.constant 0 : i32
    %c0_i32_1 = arith.constant 0 : i32
    return %arg0, %c0_i32, %c0_i32_0 : i32, i32, i32
  }
  func.func @transform_8(%arg0: i32) -> (i32, i32, i32) {
    %c0_i32 = arith.constant 0 : i32
    %c0_i32_0 = arith.constant 0 : i32
    %c0_i32_1 = arith.constant 0 : i32
    return %arg0, %c0_i32, %c0_i32_0 : i32, i32, i32
  }
  func.func @transform_9(%arg0: i32) -> (i32, i32, i32) {
    %c0_i32 = arith.constant 0 : i32
    %c0_i32_0 = arith.constant 0 : i32
    %c0_i32_1 = arith.constant 0 : i32
    return %arg0, %c0_i32, %c0_i32_0 : i32, i32, i32
  }
  func.func @transform_10(%arg0: i32) -> (i32, i32, i32) {
    %c0_i32 = arith.constant 0 : i32
    %c0_i32_0 = arith.constant 0 : i32
    %c0_i32_1 = arith.constant 0 : i32
    return %arg0, %c0_i32, %c0_i32_0 : i32, i32, i32
  }
  func.func @transform_11(%arg0: i32) -> (i32, i32, i32) {
    %c0_i32 = arith.constant 0 : i32
    %c0_i32_0 = arith.constant 0 : i32
    %c0_i32_1 = arith.constant 0 : i32
    return %arg0, %c0_i32, %c0_i32_0 : i32, i32, i32
  }
  func.func @transform_12(%arg0: i32) -> (i32, i32, i32) {
    %c0_i32 = arith.constant 0 : i32
    %c0_i32_0 = arith.constant 0 : i32
    %c0_i32_1 = arith.constant 0 : i32
    return %arg0, %c0_i32, %c0_i32_0 : i32, i32, i32
  }
  func.func @transform_13(%arg0: i32) -> (i32, i32) {
    %c0_i32 = arith.constant 0 : i32
    %c0_i32_0 = arith.constant 0 : i32
    %c0_i32_1 = arith.constant 0 : i32
    return %c0_i32, %c0_i32_0 : i32, i32
  }
  func.func @transform_14(%arg0: i32) -> (i32, i32) {
    %c0_i32 = arith.constant 0 : i32
    %c0_i32_0 = arith.constant 0 : i32
    %c0_i32_1 = arith.constant 0 : i32
    return %c0_i32, %c0_i32_0 : i32, i32
  }
  func.func @transform_15(%arg0: i32) -> (i32, i32) {
    %c0_i32 = arith.constant 0 : i32
    %c0_i32_0 = arith.constant 0 : i32
    %c0_i32_1 = arith.constant 0 : i32
    return %c0_i32, %c0_i32_0 : i32, i32
  }
}

</mosaic_0001>

<bundles_post_ra>
// kernel: tpu_custom_call.1
= control target key start
LH: loop header
LB: loop body
LE: loop exit
PB: predicated region body
PF: predicated region fallthrough
CT: control target
= control target key end

     0   :  { %s3742_s0 = inlined_call_operand.vmem [shape: f32[16,64], index: 0, kind: input, shape index: {}]   ;;  %s3743_s1 = inlined_call_operand.vmem [shape: f32[12,1,64], index: 1, kind: input, shape index: {}]   ;;  %s3744_s2 = inlined_call_operand.vmem [shape: f32[12,1,64], index: 2, kind: input, shape index: {}]   ;;  %s3745_s3 = inlined_call_operand.vmem [shape: f32[12,64,192], index: 3, kind: input, shape index: {}]   ;;  %s3746_s4 = inlined_call_operand.vmem [shape: f32[12,1,192], index: 4, kind: input, shape index: {}]   ;;  %s3747_s5 = inlined_call_operand.vmem [shape: f32[12,64,64], index: 5, kind: input, shape index: {}]   ;;  %s3748_s6 = inlined_call_operand.vmem [shape: f32[12,1,64], index: 6, kind: input, shape index: {}]   ;;  %s3749_s7 = inlined_call_operand.vmem [shape: f32[12,1,64], index: 7, kind: input, shape index: {}]   ;;  %s3750_s8 = inlined_call_operand.vmem [shape: f32[12,1,64], index: 8, kind: input, shape index: {}]   ;;  %s3751_s9 = inlined_call_operand.vmem [shape: f32[12,64,256], index: 9, kind: input, shape index: {}]   ;;  %s3752_s10 = inlined_call_operand.vmem [shape: f32[12,1,256], index: 10, kind: input, shape index: {}]   ;;  %s3753_s11 = inlined_call_operand.vmem [shape: f32[12,256,64], index: 11, kind: input, shape index: {}]   ;;  %s3754_s12 = inlined_call_operand.vmem [shape: f32[12,1,64], index: 12, kind: input, shape index: {}]   ;;  %s3755_s13 = inlined_call_operand.vmem [shape: f32[1,64], index: 13, kind: input, shape index: {}]   ;;  %s3756_s14 = inlined_call_operand.vmem [shape: f32[1,64], index: 14, kind: input, shape index: {}]   ;;  %s3757_s15 = inlined_call_operand.hbm [shape: f32[16,64], index: 15, kind: output, shape index: {}]  }
   0x1   :  { %3760 = sst [smem:[#allocation8_spill]] %s3744_s2 }
   0x2   :  { %3761 = sst [smem:[#allocation9_spill]] %s3745_s3 }
   0x3   :  { %3762 = sst [smem:[#allocation10_spill]] %s3746_s4 }
   0x4   :  { %3763 = sst [smem:[#allocation11_spill]] %s3755_s13 }
   0x5   :  { %3764 = sst [smem:[#allocation12_spill]] %s3756_s14 }
   0x6   :  { %3765 = sst [smem:[#allocation13_spill]] %s3757_s15 }
   0x7   :  { %20 = vsyncpa [#allocation4], 0  ;;  %s3339_s18 = smov 0  }
   0x8 LB: > { %3766 = sst [smem:[#allocation6_spill]] %s3245_s18  ;;  %s3345_s19 = sadd.s32 4294967295, %s3245_s18   ;;  %s3245_s18 = sphi %s3339_s18, %s26_s18  }
   0x9   : > { %p2801_p0 = scmp.ge.s32.totalorder %s3245_s18, 1  ;;  %p529_p1 = scmp.lt.s32.totalorder %s3245_s18, 13 }
   0xb   : > { %p530_p2 = pnand %p2801_p0, %p529_p1 }
   0xd   : > { %533 = sbr.rel (%p530_p2) target bundleno = 3015 (0xbc7), region = 80 }
  0x14   : > { %p613_p3 = scmp.lt.s32.totalorder %s3345_s19, 11  ;;  %s3768_s3 = sld [smem:[#allocation9_spill]] }
  0x15   : > { %s3769_s4 = sld [smem:[#allocation10_spill]]  ;;  %p2812_p4 = scmp.ne.s32.totalorder %s3345_s19, 0 }
  0x16   : > { %s3351_s20 = scalar_select %p613_p3, %s3345_s19, 11 }
  0x17   : > { %v663_v0 = vld [vmem:[%s3742_s0] sm:$0xff] (!%p2812_p4)  ;;  %vm665_vm0 = vcmask (!%p2812_p4), 523264   ;;  %v664_v1 = vld [vmem:[%s3742_s0 + $0x8] sm:$0xff] (!%p2812_p4) }
  0x18   : > { %s2860_s27 = sshll.u32 %s3351_s20, 7  ;;  %s2804_s28 = sshll.u32 %s3351_s20, 1  ;;  %666 = vst.msk [vmem:[#allocation2] sm:$0xff] (!%p2812_p4), %vm665_vm0, %v663_v0  ;;  %667 = vst.msk [vmem:[#allocation2 + $0x8] sm:$0xff] (!%p2812_p4), %vm665_vm0, %v664_v1 }
  0x19   : > { %s2861_s18 = sshll.u32 %s3351_s20, 6  ;;  %s641_s17 = scalar_lea.vmem %s3750_s8, %s3351_s20 }
  0x1a   : > { %s3366_s16 = scalar_lea.vmem %s3768_s3, %s2860_s27  ;;  %s3381_s25 = scalar_lea.vmem %s3747_s5, %s2861_s18 }
  0x1b   : > { %s3371_s22 = scalar_lea.vmem %s3769_s4, %s2804_s28  ;;  %s3399_s23 = scalar_lea.vmem %s3752_s10, %s2804_s28 }
  0x1c   : > { %3770 = sst [smem:[#allocation7_spill]] %s3371_s22  ;;  %s3394_s22 = scalar_lea.vmem %s3751_s9, %s2860_s27 }
  0x1d   : > { %s2863_s13 = sshll.u32 %s3351_s20, 8  ;;  %s658_s3 = scalar_lea.vmem %s3754_s12, %s3351_s20 }
  0x1e   : > { %s3405_s2 = scalar_lea.vmem %s3753_s11, %s2863_s13  ;;  %662 = sbr.rel (%p2812_p4) target bundleno = 37 (0x25), region = 84 }
  0x25 PF: > { %v3418_v2 = vld [vmem:[#allocation2] sm:$0xff]  ;;  %vm672_vm1 = vcmask 523264   ;;  %v3420_v3 = vld [vmem:[#allocation2 + $0x8] sm:$0xff]  ;;  %v719_v17 = vld [vmem:[%s3366_s16 + $0x18] sm:$0xff]  ;;  %v3247_v35 = vmov 0.0   ;;  %s3772_s14 = sld [smem:[#allocation7_spill]]  ;;  %v734_v57 = vlaneseq }
  0x26   : > { %v673_v4 = vsel %vm672_vm1, %v3418_v2, 0.0  ;;  %v676_v5 = vsel %vm672_vm1, %v3420_v3, 0.0  ;;  %v717_v16 = vld [vmem:[%s3366_s16 + $0x8] sm:$0xff]  ;;  %v716_v19 = vld [vmem:[%s3366_s16] sm:$0xff]  ;;  %v718_v20 = vld [vmem:[%s3366_s16 + $0x10] sm:$0xff]  ;;  %814 = vmatprep.mubr.f32.mxu0 %v3247_v35  ;;  %2944 = vmatprep.subr.mxu1 %v3247_v35  ;;  %s3773_s18 = sld [smem:[#allocation8_spill]] }
  0x27   : > { %674 = vadd.xlane.f32.xlu0 %v673_v4  ;;  %v3043_v18 = vpack.c.bf16 %v719_v17, %v717_v16  ;;  %v3045_v21 = vpack.c.bf16 %v718_v20, %v716_v19  ;;  %v721_v22 = vld [vmem:[%s3366_s16 + $0x28] sm:$0xff]  ;;  %v723_v23 = vld [vmem:[%s3366_s16 + $0x38] sm:$0xff]  ;;  %v720_v25 = vld [vmem:[%s3366_s16 + $0x20] sm:$0xff]  ;;  %v3462_v58 = vshrl.u32 %v734_v57, 7  ;;  %vm3248_vm2 = vmmov 0   ;;  %s3249_s26 = smov 112  }
  0x28   : > { %v3047_v24 = vpack.c.bf16 %v723_v23, %v721_v22  ;;  %v722_v26 = vld [vmem:[%s3366_s16 + $0x30] sm:$0xff]  ;;  %v725_v28 = vld [vmem:[%s3366_s16 + $0x48] sm:$0xff]  ;;  %v727_v29 = vld [vmem:[%s3366_s16 + $0x58] sm:$0xff]  ;;  %2946 = vmatprep.mubr.msk.f32.mxu1 %vm3248_vm2, %v3247_v35  ;;  %s3250_s4 = smov 80   ;;  %s3251_s27 = smov 64   ;;  %vm863_vm3 = vcmask 130048  }
  0x29   : > { %3044 = vmatprep.subr.bf16.mxu0 %v3043_v18  ;;  %v3049_v27 = vpack.c.bf16 %v722_v26, %v720_v25  ;;  %v724_v30 = vld [vmem:[%s3366_s16 + $0x40] sm:$0xff]  ;;  %v3051_v31 = vpack.c.bf16 %v727_v29, %v725_v28  ;;  %v726_v32 = vld [vmem:[%s3366_s16 + $0x50] sm:$0xff]  ;;  %v729_v33 = vld [vmem:[%s3366_s16 + $0x68] sm:$0xff]  ;;  %v736_v59 = vsub.s32 0, %v3462_v58  ;;  %s3252_s28 = smov 96   ;;  %v740_v16 = vsub.s32 1, %v3462_v58 }
  0x2a   : > { %3046 = vmatpush1.bf16.msra.mxu0 %v3045_v21  ;;  %v731_v34 = vld [vmem:[%s3366_s16 + $0x78] sm:$0xff]  ;;  %v3053_v36 = vpack.c.bf16 %v726_v32, %v724_v30  ;;  %v728_v38 = vld [vmem:[%s3366_s16 + $0x60] sm:$0xff]  ;;  %v730_v39 = vld [vmem:[%s3366_s16 + $0x70] sm:$0xff]  ;;  %s3771_s16 = scalar_lea.vmem %s3743_s1, %s3351_s20  ;;  %vm1478_vm4 = vcmask 64512   ;;  %s3253_s30 = smov 16   ;;  %vm2177_vm5 = vcmask 261120  }
  0x2b   : > { %677 = vadd.xlane.f32.xlu0 %v676_v5  ;;  %3048 = vmatprep.subr.bf16.mxu0 %v3047_v24  ;;  %v3055_v37 = vpack.c.bf16 %v731_v34, %v729_v33  ;;  %v3057_v40 = vpack.c.bf16 %v730_v39, %v728_v38  ;;  %v2813_v48 = vld [vmem:[%s3771_s16] ss:$0 sm:$0xff]  ;;  %s3254_s29 = smov 32   ;;  %s3255_s21 = smov 48   ;;  %vm2180_vm6 = vcmask 392192  }
  0x2c   : > { %s3774_s24 = scalar_lea.vmem %s3773_s18, %s3351_s20  ;;  %v732_v60 = vld [vmem:[%s3772_s14] sm:$0x3]  ;;  %s3775_s14 = scalar_lea.vmem %s3748_s6, %s3351_s20 }
  0x2d   : > { %v2814_v50 = vld [vmem:[%s3774_s24] ss:$0 sm:$0xff]  ;;  %v737_v61 = vrot.slane %v732_v60, %v736_v59  ;;  %v741_v18 = vrot.slane %v732_v60, %v740_v16  ;;  %s3776_s18 = scalar_lea.vmem %s3749_s7, %s3351_s20  ;;  %p2853_p5 = scmp.ne.s32.totalorder %s3345_s19, 11 }
  0x2e   : > { %3050 = vmatpush1.bf16.msra.mxu0 %v3049_v27 }
  0x2f   : > { %3052 = vmatprep.subr.bf16.mxu0 %v3051_v31 }
  0x32   : > { %3054 = vmatpush1.bf16.msra.mxu0 %v3053_v36 }
  0x33   : > { %3056 = vmatprep.subr.bf16.mxu0 %v3055_v37 }
  0x36   : > { %3058 = vmatpush1.bf16.msra.mxu0 %v3057_v40 }
  0x37   : > { %2969 = vmatprep.subr.mxu0 %v3247_v35 }
  0xb4   : > { %v675_v6 = vpop.xlane.xlu0 %674 }
  0xb5   : > { %v680_v7 = vmul.f32 0.015625, %v675_v6 }
  0xb7   : > { %v682_v8 = vsub.f32 %v3418_v2, %v680_v7 }
  0xb8   : > { %v678_v9 = vpop.xlane.xlu0 %677 }
  0xb9   : > { %v681_v10 = vmul.f32 0.015625, %v678_v9  ;;  %v684_v11 = vmul.f32 %v682_v8, %v682_v8 }
  0xbb   : > { %v683_v12 = vsub.f32 %v3420_v3, %v681_v10  ;;  %v686_v13 = vsel %vm672_vm1, %v684_v11, 0.0 }
  0xbc   : > { %687 = vadd.xlane.f32.xlu1 %v686_v13 }
  0xbd   : > { %v685_v14 = vmul.f32 %v683_v12, %v683_v12 }
  0xbf   : > { %v689_v15 = vsel %vm672_vm1, %v685_v14, 0.0 }
  0xc0   : > { %690 = vadd.xlane.f32.xlu1 %v689_v15 }
 0x149   : > { %v688_v41 = vpop.xlane.xlu1 %687 }
 0x14a   : > { %v692_v42 = vmul.f32 0.015625, %v688_v41 }
 0x14c   : > { %v694_v43 = vadd.f32 1e-05, %v692_v42 }
 0x14d   : > { %v691_v44 = vpop.xlane.xlu1 %690 }
 0x14e   : > { %3149 = vrsqrt.f32 %v694_v43  ;;  %v693_v45 = vmul.f32 0.015625, %v691_v44 }
 0x150   : > { %v695_v46 = vadd.f32 1e-05, %v693_v45 }
 0x152   : > { %3151 = vrsqrt.f32 %v695_v46 }
 0x158   : > { %v3150_v47 = vpop.eup %3149 }
 0x159   : > { %v698_v49 = vmul.f32 %v3150_v47, %v682_v8 }
 0x15b   : > { %v706_v51 = vmul.f32 %v2813_v48, %v698_v49 }
 0x15c   : > { %v3152_v52 = vpop.eup %3151 }
 0x15d   : > { %v714_v53 = vadd.f32 %v2814_v50, %v706_v51  ;;  %v699_v54 = vmul.f32 %v3152_v52, %v683_v12 }
 0x15f   : > { %2815 = vmatmul.mubr.msk.f32.vlgmr.msra.gmra.mrb[0].mxu0 %vm672_vm1, %v714_v53  ;;  %v707_v55 = vmul.f32 %v2813_v48, %v699_v54 }
 0x160   : > { %820 = vmatprep.mubr.f32.mxu0 %v3247_v35 }
 0x161   : > { %v715_v56 = vadd.f32 %v2814_v50, %v707_v55 }
 0x163   : > { %2816 = vmatmul.mubr.msk.f32.gmra.mrb[2].mxu0 %vm672_vm1, %v715_v56 }
 0x164   : > { %2971 = vmatprep.mubr.msk.f32.mxu0 %vm3248_vm2, %v3247_v35 }
 0x232   : > { %v816_v62 = vpop.f32.mrb[0].mxu0 }
 0x233   : > { %v817_v63 = vadd.f32 %v816_v62, %v737_v61  ;;  %v818_v0 = vpop.f32.mrb[1].mxu0 }
 0x234   : > { %v3511_v21 = vadd.f32 %v818_v0, %v741_v18 }
 0x235   : > { %829 = vrot.lane.b32.xlu0 %v817_v63, %s3249_s26 }
 0x236   : > { %v822_v1 = vpop.f32.mrb[2].mxu0 }
 0x237   : > { %v823_v4 = vadd.f32 %v822_v1, %v737_v61  ;;  %v3473_v5 = vpop.f32.mrb[3].mxu0 }
 0x238   : > { %v3522_v23 = vadd.f32 %v3473_v5, %v741_v18 }
 0x239   : > { %837 = vrot.lane.b32.xlu0 %v817_v63, %s3250_s4  ;;  %831 = vrot.lane.b32.xlu1 %v823_v4, %s3249_s26 }
 0x23d   : > { %861 = vrot.lane.b32.xlu0 %v817_v63, %s3251_s27  ;;  %833 = vrot.lane.b32.xlu1 %v817_v63, %s3252_s28 }
 0x241   : > { %835 = vrot.lane.b32.xlu1 %v823_v4, %s3252_s28 }
 0x245   : > { %839 = vrot.lane.b32.xlu1 %v823_v4, %s3250_s4 }
 0x249   : > { %938 = vrot.lane.b32.xlu1 %v823_v4, %s3251_s27 }
 0x2a7   : > { %v830_v6 = vpop.permute.xlu0 %829 }
 0x2a8   : > { %1014 = vrot.lane.b32.xlu0 %v830_v6, %s3251_s27 }
 0x2ab   : > { %v832_v7 = vpop.permute.xlu1 %831  ;;  %v838_v8 = vpop.permute.xlu0 %837 }
 0x2ac   : > { %1090 = vrot.lane.b32.xlu1 %v832_v7, %s3251_s27 }
 0x2af   : > { %v834_v9 = vpop.permute.xlu1 %833  ;;  %v862_v10 = vpop.permute.xlu0 %861 }
 0x2b0   : > { %1166 = vrot.lane.b32.xlu0 %v834_v9, %s3251_s27  ;;  %2945 = vmatpush3.xpose.msk.msra.mxu1 %vm863_vm3, %v862_v10 }
 0x2b1   : > { %2949 = vmatprep.subr.mxu1 %v3247_v35 }
 0x2b3   : > { %v836_v11 = vpop.permute.xlu1 %835  ;;  %2947 = vmatmul.mubr.msk.f32.vlgmr.msra.gmra.mrb[0].mxu1 %vm863_vm3, %v817_v63 }
 0x2b4   : > { %1242 = vrot.lane.b32.xlu1 %v836_v11, %s3251_s27  ;;  %1318 = vrot.lane.b32.xlu0 %v838_v8, %s3251_s27 }
 0x2b5   : > { %2951 = vmatprep.mubr.msk.f32.mxu1 %vm3248_vm2, %v3247_v35 }
 0x2b7   : > { %v840_v12 = vpop.permute.xlu1 %839 }
 0x2b8   : > { %1394 = vrot.lane.b32.xlu1 %v840_v12, %s3251_s27  ;;  %s3778_s27 = sld [smem:[#allocation12_spill]] (!%p2853_p5) }
 0x2bb   : > { %v939_v13 = vpop.permute.xlu1 %938 }
 0x2bc   : > { %2950 = vmatpush3.xpose.msk.msra.mxu1 %vm863_vm3, %v939_v13 }
 0x2bd   : > { %2954 = vmatprep.subr.mxu1 %v3247_v35 }
 0x2bf   : > { %2952 = vmatmul.mubr.msk.f32.vlgmr.msra.gmra.mrb[2].mxu1 %vm863_vm3, %v823_v4 }
 0x2c0   : > { %2956 = vmatprep.mubr.msk.f32.mxu1 %vm3248_vm2, %v3247_v35 }
 0x31a   : > { %v1015_v14 = vpop.permute.xlu0 %1014 }
 0x31b   : > { %2955 = vmatpush3.xpose.msk.msra.mxu1 %vm863_vm3, %v1015_v14 }
 0x31c   : > { %2959 = vmatprep.subr.mxu1 %v3247_v35 }
 0x31e   : > { %v1091_v15 = vpop.permute.xlu1 %1090  ;;  %2957 = vmatmul.mubr.msk.f32.vlgmr.msra.gmra.mrb[4].mxu1 %vm863_vm3, %v830_v6 }
 0x31f   : > { %2960 = vmatpush3.xpose.msk.msra.mxu1 %vm863_vm3, %v1091_v15  ;;  %2961 = vmatprep.mubr.msk.f32.mxu1 %vm3248_vm2, %v3247_v35 }
 0x320   : > { %2964 = vmatprep.subr.mxu1 %v3247_v35 }
 0x322   : > { %2962 = vmatmul.mubr.msk.f32.vlgmr.msra.gmra.mrb[6].mxu1 %vm863_vm3, %v832_v7  ;;  %v1167_v17 = vpop.permute.xlu0 %1166 }
 0x323   : > { %2965 = vmatpush3.xpose.msk.msra.mxu1 %vm863_vm3, %v1167_v17  ;;  %2966 = vmatprep.mubr.msk.f32.mxu1 %vm3248_vm2, %v3247_v35 }
 0x324   : > { %2974 = vmatprep.subr.mxu1 %v3247_v35 }
 0x326   : > { %v1243_v19 = vpop.permute.xlu1 %1242  ;;  %2967 = vmatmul.mubr.msk.f32.vlgmr.msra.gmra.mrb[8].mxu1 %vm863_vm3, %v834_v9  ;;  %v1319_v20 = vpop.permute.xlu0 %1318 }
 0x327   : > { %2970 = vmatpush3.xpose.msk.msra.mxu0 %vm863_vm3, %v1243_v19  ;;  %2975 = vmatpush3.xpose.msk.msra.mxu1 %vm863_vm3, %v1319_v20 }
 0x328   : > { %2976 = vmatprep.mubr.msk.f32.mxu1 %vm3248_vm2, %v3247_v35  ;;  %2979 = vmatprep.subr.mxu0 %v3247_v35 }
 0x329   : > { %2984 = vmatprep.subr.mxu1 %v3247_v35 }
 0x32a   : > { %2972 = vmatmul.mubr.msk.f32.vlgmr.msra.gmra.mrb[4].mxu0 %vm863_vm3, %v836_v11  ;;  %v1395_v22 = vpop.permute.xlu1 %1394  ;;  %2977 = vmatmul.mubr.msk.f32.vlgmr.msra.gmra.mrb[10].mxu1 %vm863_vm3, %v838_v8 }
 0x32b   : > { %2980 = vmatpush3.xpose.msk.msra.mxu0 %vm863_vm3, %v1395_v22  ;;  %2985 = vmatpush3.msra.mxu1 %v3511_v21 }
 0x32c   : > { %2981 = vmatprep.mubr.msk.f32.mxu0 %vm3248_vm2, %v3247_v35  ;;  %2989 = vmatprep.subr.mxu0 %v3247_v35 }
 0x32d   : > { %2986 = vmatprep.mubr.msk.f32.mxu1 %vm3248_vm2, %v3247_v35  ;;  %2994 = vmatprep.subr.mxu1 %v3247_v35 }
 0x32e   : > { %2982 = vmatmul.mubr.msk.f32.vlgmr.msra.gmra.mrb[6].mxu0 %vm863_vm3, %v840_v12 }
 0x32f   : > { %2990 = vmatpush3.msra.mxu0 %v3522_v23  ;;  %2991 = vmatprep.mubr.msk.f32.mxu0 %vm3248_vm2, %v3247_v35 }
 0x330   : > { %2999 = vmatprep.subr.mxu0 %v3247_v35 }
 0x386   : > { %v934_v24 = vpop.f32.mrb[0].mxu1 }
 0x387   : > { %v1470_v25 = vmul.f32 0.25, %v934_v24  ;;  %v2948_v26 = vpop.f32.mrb[1].mxu1 }
 0x389   : > { %v1479_v27 = vsel %vm1478_vm4, %v1470_v25, -inf }
 0x38a   : > { %1480 = vmax.xlane.f32.xlu0 %v1479_v27 }
 0x392   : > { %v1010_v28 = vpop.f32.mrb[2].mxu1 }
 0x393   : > { %v1471_v29 = vmul.f32 0.25, %v1010_v28  ;;  %v2953_v30 = vpop.f32.mrb[3].mxu1 }
 0x395   : > { %v1482_v31 = vsel %vm1478_vm4, %v1471_v29, -inf }
 0x396   : > { %1483 = vmax.xlane.f32.xlu1 %v1482_v31 }
 0x3f1   : > { %v1086_v32 = vpop.f32.mrb[4].mxu1 }
 0x3f2   : > { %v1472_v33 = vmul.f32 0.25, %v1086_v32  ;;  %v2958_v34 = vpop.f32.mrb[5].mxu1 }
 0x3f4   : > { %v1485_v36 = vsel %vm1478_vm4, %v1472_v33, -inf }
 0x3f5   : > { %1486 = vmax.xlane.f32.xlu0 %v1485_v36  ;;  %v1162_v37 = vpop.f32.mrb[6].mxu1 }
 0x3f6   : > { %v1473_v38 = vmul.f32 0.25, %v1162_v37  ;;  %v2963_v39 = vpop.f32.mrb[7].mxu1 }
 0x3f8   : > { %v1488_v40 = vsel %vm1478_vm4, %v1473_v38, -inf }
 0x3f9   : > { %1489 = vmax.xlane.f32.xlu0 %v1488_v40  ;;  %v1238_v41 = vpop.f32.mrb[8].mxu1 }
 0x3fa   : > { %v1474_v42 = vmul.f32 0.25, %v1238_v41  ;;  %v2968_v43 = vpop.f32.mrb[9].mxu1 }
 0x3fc   : > { %v1491_v44 = vsel %vm1478_vm4, %v1474_v42, -inf }
 0x3fd   : > { %v1314_v45 = vpop.f32.mrb[4].mxu0  ;;  %1492 = vmax.xlane.f32.xlu0 %v1491_v44  ;;  %v1390_v46 = vpop.f32.mrb[10].mxu1 }
 0x3fe   : > { %v1475_v47 = vmul.f32 0.25, %v1314_v45  ;;  %v1476_v48 = vmul.f32 0.25, %v1390_v46  ;;  %v2973_v49 = vpop.f32.mrb[5].mxu0  ;;  %v2978_v50 = vpop.f32.mrb[11].mxu1 }
 0x400   : > { %v1494_v51 = vsel %vm1478_vm4, %v1475_v47, -inf  ;;  %v1497_v52 = vsel %vm1478_vm4, %v1476_v48, -inf }
 0x401   : > { %v1466_v53 = vpop.f32.mrb[6].mxu0  ;;  %1495 = vmax.xlane.f32.xlu1 %v1494_v51  ;;  %1498 = vmax.xlane.f32.xlu0 %v1497_v52 }
 0x402   : > { %v1477_v54 = vmul.f32 0.25, %v1466_v53  ;;  %v2983_v55 = vpop.f32.mrb[7].mxu0 }
 0x404   : > { %v1500_v56 = vsel %vm1478_vm4, %v1477_v54, -inf }
 0x405   : > { %1501 = vmax.xlane.f32.xlu1 %v1500_v56 }
 0x416   : > { %845 = vrot.lane.b32.xlu1 %v3522_v23, %s3249_s26 }
 0x417   : > { %843 = vrot.lane.b32.xlu0 %v3511_v21, %s3249_s26  ;;  %v1481_v57 = vpop.xlane.xlu0 %1480 }
 0x418   : > { %v1503_v60 = vsub.f32 %v1470_v25, %v1481_v57 }
 0x41a   : > { %849 = vrot.lane.b32.xlu1 %v3511_v21, %s3252_s28  ;;  %v1511_v61 = vmul.f32 1.442695, %v1503_v60 }
 0x41c   : > { %3153 = vpow2.f32 %v1511_v61 }
 0x41e   : > { %851 = vrot.lane.b32.xlu1 %v3522_v23, %s3252_s28 }
 0x423   : > { %v1484_v62 = vpop.xlane.xlu1 %1483 }
 0x424   : > { %v1504_v63 = vsub.f32 %v1471_v29, %v1484_v62 }
 0x426   : > { %v1513_v0 = vmul.f32 1.442695, %v1504_v63  ;;  %v3154_v1 = vpop.eup %3153 }
 0x427   : > { %v1527_v4 = vsel %vm1478_vm4, %v3154_v1, 0.0 }
 0x428   : > { %3155 = vpow2.f32 %v1513_v0 }
 0x432   : > { %v3156_v5 = vpop.eup %3155 }
 0x433   : > { %v1530_v6 = vsel %vm1478_vm4, %v3156_v5, 0.0 }
 0x436   : > { %1528 = vadd.xlane.f32.xlu0 %v1527_v4 }
 0x442   : > { %1531 = vadd.xlane.f32.xlu1 %v1530_v6 }
 0x482   : > { %v1487_v7 = vpop.xlane.xlu0 %1486 }
 0x483   : > { %v1505_v8 = vsub.f32 %v1472_v33, %v1487_v7 }
 0x485   : > { %v1515_v9 = vmul.f32 1.442695, %v1505_v8 }
 0x486   : > { %v1490_v10 = vpop.xlane.xlu0 %1489 }
 0x487   : > { %3157 = vpow2.f32 %v1515_v9  ;;  %v1506_v11 = vsub.f32 %v1473_v38, %v1490_v10 }
 0x489   : > { %v1517_v12 = vmul.f32 1.442695, %v1506_v11 }
 0x48a   : > { %v1493_v13 = vpop.xlane.xlu0 %1492 }
 0x48b   : > { %3159 = vpow2.f32 %v1517_v12  ;;  %v1507_v14 = vsub.f32 %v1474_v42, %v1493_v13  ;;  %v2183_v13 = vld [vmem:[%s3381_s25] sm:$0xff] }
 0x48d   : > { %v1519_v15 = vmul.f32 1.442695, %v1507_v14  ;;  %v2184_v14 = vld [vmem:[%s3381_s25 + $0x8] sm:$0xff] }
 0x48e   : > { %v1496_v17 = vpop.xlane.xlu1 %1495  ;;  %v1499_v18 = vpop.xlane.xlu0 %1498 }
 0x48f   : > { %3161 = vpow2.f32 %v1519_v15  ;;  %v1508_v19 = vsub.f32 %v1475_v47, %v1496_v17  ;;  %v1509_v20 = vsub.f32 %v1476_v48, %v1499_v18  ;;  %v3059_v15 = vpack.c.bf16 %v2184_v14, %v2183_v13  ;;  %v2185_v17 = vld [vmem:[%s3381_s25 + $0x10] sm:$0xff]  ;;  %v2186_v18 = vld [vmem:[%s3381_s25 + $0x18] sm:$0xff]  ;;  %v2330_v14 = vld [vmem:[%s3394_s22 + $0x28] sm:$0xff] }
 0x491   : > { %v3158_v22 = vpop.eup %3157  ;;  %v1521_v24 = vmul.f32 1.442695, %v1508_v19  ;;  %v1523_v25 = vmul.f32 1.442695, %v1509_v20  ;;  %v3063_v19 = vpack.c.bf16 %v2186_v18, %v2185_v17  ;;  %v2187_v20 = vld [vmem:[%s3381_s25 + $0x20] sm:$0xff] }
 0x492   : > { %v1502_v26 = vpop.xlane.xlu1 %1501  ;;  %v1533_v27 = vsel %vm1478_vm4, %v3158_v22, 0.0  ;;  %v844_v41 = vpop.permute.xlu0 %843  ;;  %v2329_v18 = vld [vmem:[%s3394_s22 + $0x20] sm:$0xff] }
 0x493   : > { %3163 = vpow2.f32 %v1521_v24  ;;  %v1510_v28 = vsub.f32 %v1477_v54, %v1502_v26  ;;  %1534 = vadd.xlane.f32.xlu0 %v1533_v27  ;;  %v2190_v26 = vld [vmem:[%s3381_s25 + $0x38] sm:$0xff] }
 0x494   : > { %3165 = vpow2.f32 %v1523_v25  ;;  %v2189_v25 = vld [vmem:[%s3381_s25 + $0x30] sm:$0xff] }
 0x495   : > { %v3160_v29 = vpop.eup %3159  ;;  %v1525_v30 = vmul.f32 1.442695, %v1510_v28  ;;  %v3071_v28 = vpack.c.bf16 %v2190_v26, %v2189_v25  ;;  %v2333_v26 = vld [vmem:[%s3394_s22 + $0x40] sm:$0xff] }
 0x496   : > { %v1536_v31 = vsel %vm1478_vm4, %v3160_v29, 0.0  ;;  %v846_v42 = vpop.permute.xlu1 %845 }
 0x497   : > { %3167 = vpow2.f32 %v1525_v30  ;;  %1537 = vadd.xlane.f32.xlu1 %v1536_v31 }
 0x499   : > { %v3162_v32 = vpop.eup %3161 }
 0x49a   : > { %v1539_v33 = vsel %vm1478_vm4, %v3162_v32, 0.0  ;;  %v850_v44 = vpop.permute.xlu1 %849 }
 0x49b   : > { %1540 = vadd.xlane.f32.xlu0 %v1539_v33 }
 0x49d   : > { %v3553_v34 = vpop.eup %3163 }
 0x49e   : > { %v3555_v36 = vpop.eup %3165  ;;  %v1542_v37 = vsel %vm1478_vm4, %v3553_v34, 0.0  ;;  %v852_v45 = vpop.permute.xlu1 %851 }
 0x49f   : > { %1543 = vadd.xlane.f32.xlu1 %v1542_v37  ;;  %v1545_v38 = vsel %vm1478_vm4, %v3555_v36, 0.0 }
 0x4a0   : > { %1546 = vadd.xlane.f32.xlu0 %v1545_v38 }
 0x4a1   : > { %v3561_v39 = vpop.eup %3167 }
 0x4a2   : > { %v1548_v40 = vsel %vm1478_vm4, %v3561_v39, 0.0 }
 0x4a3   : > { %1549 = vadd.xlane.f32.xlu1 %v1548_v40 }
 0x4b4   : > { %857 = vrot.lane.b32.xlu1 %v3522_v23, %s3250_s4 }
 0x4b6   : > { %855 = vrot.lane.b32.xlu0 %v3511_v21, %s3250_s4 }
 0x4c3   : > { %v1529_v43 = vpop.xlane.xlu0 %1528 }
 0x4c4   : > { %3169 = vrcp.f32 %v1529_v43 }
 0x4ce   : > { %v3170_v46 = vpop.eup %3169 }
 0x4cf   : > { %v1559_v47 = vmul.f32 %v3170_v46, %v3154_v1  ;;  %v1532_v48 = vpop.xlane.xlu1 %1531 }
 0x4d0   : > { %3171 = vrcp.f32 %v1532_v48 }
 0x4d1   : > { %2987 = vmatmul.mubr.msk.f32.vlgmr.msra.gmra.mrb[12].mxu1 %vm1478_vm4, %v1559_v47 }
 0x4d2   : > { %2995 = vmatpush3.msra.mxu1 %v844_v41  ;;  %2996 = vmatprep.mubr.msk.f32.mxu1 %vm3248_vm2, %v3247_v35 }
 0x4d3   : > { %3004 = vmatprep.subr.mxu1 %v3247_v35 }
 0x4da   : > { %v3172_v23 = vpop.eup %3171 }
 0x4db   : > { %v1560_v21 = vmul.f32 %v3172_v23, %v3156_v5 }
 0x4dd   : > { %2992 = vmatmul.mubr.msk.f32.vlgmr.msra.gmra.mrb[8].mxu0 %vm1478_vm4, %v1560_v21 }
 0x4de   : > { %3000 = vmatpush3.msra.mxu0 %v846_v42  ;;  %3001 = vmatprep.mubr.msk.f32.mxu0 %vm3248_vm2, %v3247_v35 }
 0x4df   : > { %3009 = vmatprep.subr.mxu0 %v3247_v35 }
 0x520   : > { %v1535_v49 = vpop.xlane.xlu0 %1534 }
 0x521   : > { %3173 = vrcp.f32 %v1535_v49 }
 0x524   : > { %v1538_v50 = vpop.xlane.xlu1 %1537 }
 0x525   : > { %3175 = vrcp.f32 %v1538_v50 }
 0x528   : > { %v1541_v51 = vpop.xlane.xlu0 %1540 }
 0x529   : > { %3177 = vrcp.f32 %v1541_v51  ;;  %v2841_v51 = vld [vmem:[%s3775_s14] ss:$0 sm:$0xff] }
 0x52b   : > { %v3174_v52 = vpop.eup %3173 }
 0x52c   : > { %v1561_v53 = vmul.f32 %v3174_v52, %v3158_v22  ;;  %v1544_v54 = vpop.xlane.xlu1 %1543  ;;  %v2188_v22 = vld [vmem:[%s3381_s25 + $0x28] sm:$0xff] }
 0x52d   : > { %3179 = vrcp.f32 %v1544_v54  ;;  %v1547_v55 = vpop.xlane.xlu0 %1546  ;;  %v3067_v24 = vpack.c.bf16 %v2188_v22, %v2187_v20  ;;  %v2334_v22 = vld [vmem:[%s3394_s22 + $0x48] sm:$0xff] }
 0x52e   : > { %3181 = vrcp.f32 %v1547_v55  ;;  %2997 = vmatmul.mubr.msk.f32.vlgmr.msra.gmra.mrb[14].mxu1 %vm1478_vm4, %v1561_v53 }
 0x52f   : > { %v3176_v56 = vpop.eup %3175  ;;  %3005 = vmatpush3.msra.mxu1 %v850_v44  ;;  %3006 = vmatprep.mubr.msk.f32.mxu1 %vm3248_vm2, %v3247_v35 }
 0x530   : > { %v1562_v57 = vmul.f32 %v3176_v56, %v3160_v29  ;;  %v1550_v60 = vpop.xlane.xlu1 %1549  ;;  %3014 = vmatprep.subr.mxu1 %v3247_v35 }
 0x531   : > { %3183 = vrcp.f32 %v1550_v60  ;;  %v856_v63 = vpop.permute.xlu0 %855 }
 0x532   : > { %3002 = vmatmul.mubr.msk.f32.vlgmr.msra.gmra.mrb[10].mxu0 %vm1478_vm4, %v1562_v57 }
 0x533   : > { %v3178_v61 = vpop.eup %3177  ;;  %3010 = vmatpush3.msra.mxu0 %v852_v45  ;;  %3011 = vmatprep.mubr.msk.f32.mxu0 %vm3248_vm2, %v3247_v35 }
 0x534   : > { %v1563_v62 = vmul.f32 %v3178_v61, %v3162_v32  ;;  %3019 = vmatprep.subr.mxu0 %v3247_v35  ;;  %v858_v6 = vpop.permute.xlu1 %857 }
 0x536   : > { %3007 = vmatmul.mubr.msk.f32.vlgmr.msra.gmra.mrb[16].mxu1 %vm1478_vm4, %v1563_v62 }
 0x537   : > { %v3180_v0 = vpop.eup %3179  ;;  %3015 = vmatpush3.msra.mxu1 %v856_v63  ;;  %3016 = vmatprep.mubr.msk.f32.mxu1 %vm3248_vm2, %v3247_v35 }
 0x538   : > { %v3182_v1 = vpop.eup %3181  ;;  %v1564_v4 = vmul.f32 %v3180_v0, %v3553_v34 }
 0x539   : > { %v1565_v5 = vmul.f32 %v3182_v1, %v3555_v36 }
 0x53a   : > { %3012 = vmatmul.mubr.msk.f32.vlgmr.msra.gmra.mrb[12].mxu0 %vm1478_vm4, %v1564_v4 }
 0x53b   : > { %v3184_v7 = vpop.eup %3183  ;;  %3017 = vmatmul.mubr.msk.f32.vlgmr.msra.gmra.mrb[18].mxu1 %vm1478_vm4, %v1565_v5  ;;  %3020 = vmatpush3.msra.mxu0 %v858_v6 }
 0x53c   : > { %v1566_v8 = vmul.f32 %v3184_v7, %v3561_v39  ;;  %3021 = vmatprep.mubr.msk.f32.mxu0 %vm3248_vm2, %v3247_v35  ;;  %3060 = vmatprep.subr.bf16.mxu0 %v3059_v15 }
 0x53e   : > { %3022 = vmatmul.mubr.msk.f32.vlgmr.msra.gmra.mrb[14].mxu0 %vm1478_vm4, %v1566_v8  ;;  %v2326_v8 = vld [vmem:[%s3394_s22 + $0x8] sm:$0xff] }
 0x53f   : > { %3062 = vmatpush3.bf16.msra.mxu0 %v3059_v15  ;;  %v2332_v15 = vld [vmem:[%s3394_s22 + $0x38] sm:$0xff] }
 0x540   : > { %3064 = vmatprep.subr.bf16.mxu0 %v3063_v19  ;;  %v3079_v17 = vpack.c.bf16 %v2332_v15, %v2330_v14  ;;  %v2493_v14 = vld [vmem:[%s3405_s2 + $0xc8] sm:$0xff] }
 0x543   : > { %3066 = vmatpush3.bf16.msra.mxu0 %v3063_v19  ;;  %v2331_v19 = vld [vmem:[%s3394_s22 + $0x30] sm:$0xff] }
 0x544   : > { %3068 = vmatprep.subr.bf16.mxu0 %v3067_v24  ;;  %v3081_v20 = vpack.c.bf16 %v2331_v19, %v2329_v18  ;;  %v2477_v18 = vld [vmem:[%s3405_s2 + $0x48] sm:$0xff] }
 0x547   : > { %3070 = vmatpush3.bf16.msra.mxu0 %v3067_v24  ;;  %v2336_v24 = vld [vmem:[%s3394_s22 + $0x58] sm:$0xff] }
 0x548   : > { %3072 = vmatprep.subr.bf16.mxu0 %v3071_v28  ;;  %v3083_v25 = vpack.c.bf16 %v2336_v24, %v2334_v22  ;;  %v2495_v22 = vld [vmem:[%s3405_s2 + $0xd8] sm:$0xff] }
 0x54b   : > { %3074 = vmatpush3.bf16.msra.mxu0 %v3071_v28 }
 0x5a4   : > { %v1636_v9 = vpop.f32.mrb[12].mxu1 }
 0x5a5   : > { %v2988_v10 = vpop.f32.mrb[13].mxu1 }
 0x5b0   : > { %v1709_v11 = vpop.f32.mrb[8].mxu0 }
 0x5b1   : > { %v2993_v12 = vpop.f32.mrb[9].mxu0 }
 0x5b2   : > { %v2327_v12 = vld [vmem:[%s3394_s22 + $0x10] sm:$0xff] }
 0x601   : > { %v1782_v27 = vpop.f32.mrb[14].mxu1 }
 0x602   : > { %2153 = vrot.lane.b32.xlu0 %v1782_v27, %s3253_s30  ;;  %v2998_v29 = vpop.f32.mrb[15].mxu1  ;;  %v2335_v27 = vld [vmem:[%s3394_s22 + $0x50] sm:$0xff] }
 0x603   : > { %v3085_v28 = vpack.c.bf16 %v2335_v27, %v2333_v26  ;;  %v2338_v29 = vld [vmem:[%s3394_s22 + $0x68] sm:$0xff]  ;;  %v2479_v26 = vld [vmem:[%s3405_s2 + $0x58] sm:$0xff] }
 0x605   : > { %v1855_v30 = vpop.f32.mrb[10].mxu0 }
 0x606   : > { %2155 = vrot.lane.b32.xlu1 %v1855_v30, %s3253_s30  ;;  %v3003_v31 = vpop.f32.mrb[11].mxu0  ;;  %v2340_v30 = vld [vmem:[%s3394_s22 + $0x78] sm:$0xff] }
 0x607   : > { %v2337_v31 = vld [vmem:[%s3394_s22 + $0x60] sm:$0xff] }
 0x609   : > { %v1928_v32 = vpop.f32.mrb[16].mxu1 }
 0x60a   : > { %2161 = vrot.lane.b32.xlu0 %v1928_v32, %s3254_s29  ;;  %v3008_v33 = vpop.f32.mrb[17].mxu1  ;;  %v3087_v32 = vpack.c.bf16 %v2340_v30, %v2338_v29  ;;  %v2497_v29 = vld [vmem:[%s3405_s2 + $0xe8] sm:$0xff] }
 0x60b   : > { %v2339_v33 = vld [vmem:[%s3394_s22 + $0x70] sm:$0xff] }
 0x60d   : > { %v2001_v34 = vpop.f32.mrb[12].mxu0 }
 0x60e   : > { %v2074_v36 = vpop.f32.mrb[18].mxu1  ;;  %2163 = vrot.lane.b32.xlu1 %v2001_v34, %s3254_s29  ;;  %v3013_v37 = vpop.f32.mrb[13].mxu0  ;;  %v3089_v34 = vpack.c.bf16 %v2339_v33, %v2337_v31  ;;  %v2480_v31 = vld [vmem:[%s3405_s2 + $0x60] sm:$0xff] }
 0x60f   : > { %2169 = vrot.lane.b32.xlu0 %v2074_v36, %s3255_s21  ;;  %v3018_v38 = vpop.f32.mrb[19].mxu1 }
 0x611   : > { %v2147_v39 = vpop.f32.mrb[14].mxu0 }
 0x612   : > { %2171 = vrot.lane.b32.xlu1 %v2147_v39, %s3255_s21  ;;  %v3023_v40 = vpop.f32.mrb[15].mxu0 }
 0x674   : > { %v2154_v41 = vpop.permute.xlu0 %2153 }
 0x675   : > { %v2175_v44 = vsel %vm863_vm3, %v1636_v9, %v2154_v41  ;;  %v2328_v9 = vld [vmem:[%s3394_s22 + $0x18] sm:$0xff] }
 0x676   : > { %v3075_v10 = vpack.c.bf16 %v2328_v9, %v2326_v8  ;;  %v2491_v8 = vld [vmem:[%s3405_s2 + $0xb8] sm:$0xff] }
 0x678   : > { %v2156_v42 = vpop.permute.xlu1 %2155  ;;  %3076 = vmatprep.subr.bf16.mxu0 %v3075_v10  ;;  %v2474_v10 = vld [vmem:[%s3405_s2 + $0x30] sm:$0xff] }
 0x679   : > { %v2176_v23 = vsel %vm863_vm3, %v1709_v11, %v2156_v42  ;;  %v2325_v11 = vld [vmem:[%s3394_s22] sm:$0xff] }
 0x67a   : > { %v3077_v13 = vpack.c.bf16 %v2327_v12, %v2325_v11  ;;  %v2475_v11 = vld [vmem:[%s3405_s2 + $0x38] sm:$0xff] }
 0x67b   : > { %v3105_v12 = vpack.c.bf16 %v2475_v11, %v2474_v10  ;;  %v2852_v11 = vld [vmem:[%s658_s3] ss:$0 sm:$0xff]  ;;  %s3777_s3 = sld [smem:[#allocation11_spill]] (!%p2853_p5) }
 0x67c   : > { %v2162_v43 = vpop.permute.xlu0 %2161 }
 0x67d   : > { %v2178_v46 = vsel %vm2177_vm5, %v2175_v44, %v2162_v43  ;;  %v2844_v43 = vld [vmem:[%s3776_s18] ss:$0 sm:$0xff] }
 0x680   : > { %v2164_v45 = vpop.permute.xlu1 %2163 }
 0x681   : > { %v2170_v47 = vpop.permute.xlu0 %2169  ;;  %v2179_v21 = vsel %vm2177_vm5, %v2176_v23, %v2164_v45  ;;  %v2845_v45 = vld [vmem:[%s641_s17] ss:$0 sm:$0xff] }
 0x682   : > { %v2181_v48 = vsel %vm2180_vm6, %v2178_v46, %v2170_v47 }
 0x683   : > { %3040 = vmatprep.mubr.msk.f32.mxu0 %vm672_vm1, %v2181_v48 }
 0x684   : > { %v2172_v49 = vpop.permute.xlu1 %2171 }
 0x685   : > { %v2182_v50 = vsel %vm2180_vm6, %v2179_v21, %v2172_v49 }
 0x686   : > { %3041 = vmatmul.mubr.msk.f32.vlgmr.msra.gmra.mrb[16].mxu0 %vm672_vm1, %v2182_v50  ;;  %v2484_v50 = vld [vmem:[%s3405_s2 + $0x80] sm:$0xff] }
 0x687   : > { %2423 = vmatprep.mubr.f32.mxu0 %v3247_v35  ;;  %3078 = vmatpush1.bf16.msra.mxu0 %v3077_v13  ;;  %v2492_v13 = vld [vmem:[%s3405_s2 + $0xc0] sm:$0xff] }
 0x688   : > { %3080 = vmatprep.subr.bf16.mxu0 %v3079_v17  ;;  %v3107_v15 = vpack.c.bf16 %v2493_v14, %v2492_v13  ;;  %v2476_v17 = vld [vmem:[%s3405_s2 + $0x40] sm:$0xff] }
 0x689   : > { %v3109_v19 = vpack.c.bf16 %v2477_v18, %v2476_v17 }
 0x68b   : > { %3082 = vmatpush1.bf16.msra.mxu0 %v3081_v20  ;;  %v2494_v20 = vld [vmem:[%s3405_s2 + $0xd0] sm:$0xff] }
 0x68c   : > { %3084 = vmatprep.subr.bf16.mxu0 %v3083_v25  ;;  %v3111_v24 = vpack.c.bf16 %v2495_v22, %v2494_v20  ;;  %v2478_v25 = vld [vmem:[%s3405_s2 + $0x50] sm:$0xff] }
 0x68d   : > { %v3113_v27 = vpack.c.bf16 %v2479_v26, %v2478_v25 }
 0x68f   : > { %3086 = vmatpush1.bf16.msra.mxu0 %v3085_v28  ;;  %v2496_v28 = vld [vmem:[%s3405_s2 + $0xe0] sm:$0xff] }
 0x690   : > { %3088 = vmatprep.subr.bf16.mxu0 %v3087_v32  ;;  %v3115_v30 = vpack.c.bf16 %v2497_v29, %v2496_v28  ;;  %v2481_v32 = vld [vmem:[%s3405_s2 + $0x68] sm:$0xff] }
 0x691   : > { %v3117_v33 = vpack.c.bf16 %v2481_v32, %v2480_v31 }
 0x693   : > { %3090 = vmatpush1.bf16.msra.mxu0 %v3089_v34  ;;  %v2498_v34 = vld [vmem:[%s3405_s2 + $0xf0] sm:$0xff] }
 0x759   : > { %v3042_v52 = vpop.f32.mrb[16].mxu0 }
 0x75a   : > { %v2276_v53 = vadd.f32 %v3042_v52, %v2841_v51  ;;  %v2270_v54 = vpop.f32.mrb[17].mxu0 }
 0x75b   : > { %v2271_v55 = vadd.f32 %v2841_v51, %v2270_v54  ;;  %v2485_v51 = vld [vmem:[%s3405_s2 + $0x88] sm:$0xff] }
 0x75c   : > { %v3615_v56 = vadd.f32 %v2276_v53, %v3420_v3  ;;  %v3091_v52 = vpack.c.bf16 %v2485_v51, %v2484_v50  ;;  %v2468_v53 = vld [vmem:[%s3405_s2] sm:$0xff]  ;;  %v2469_v54 = vld [vmem:[%s3405_s2 + $0x8] sm:$0xff] }
 0x75d   : > { %v3618_v57 = vadd.f32 %v2271_v55, %v3418_v2  ;;  %v3093_v55 = vpack.c.bf16 %v2469_v54, %v2468_v53 }
 0x75e   : > { %v2286_v60 = vsel %vm672_vm1, %v3615_v56, 0.0  ;;  %3092 = vmatprep.subr.bf16.mxu1 %v3091_v52 }
 0x75f   : > { %2287 = vadd.xlane.f32.xlu1 %v2286_v60  ;;  %v2283_v61 = vsel %vm672_vm1, %v3618_v57, 0.0  ;;  %3094 = vmatpush3.bf16.msra.mxu1 %v3093_v55  ;;  %v2486_v60 = vld [vmem:[%s3405_s2 + $0x90] sm:$0xff] }
 0x760   : > { %2284 = vadd.xlane.f32.xlu0 %v2283_v61  ;;  %v2487_v61 = vld [vmem:[%s3405_s2 + $0x98] sm:$0xff] }
 0x7ec   : > { %v2288_v62 = vpop.xlane.xlu1 %2287 }
 0x7ed   : > { %v2290_v63 = vmul.f32 0.015625, %v2288_v62  ;;  %v2285_v0 = vpop.xlane.xlu0 %2284  ;;  %v2470_v62 = vld [vmem:[%s3405_s2 + $0x10] sm:$0xff] }
 0x7ee   : > { %v2289_v3 = vmul.f32 0.015625, %v2285_v0 }
 0x7ef   : > { %v2292_v1 = vsub.f32 %v3615_v56, %v2290_v63  ;;  %v2471_v63 = vld [vmem:[%s3405_s2 + $0x18] sm:$0xff] }
 0x7f0   : > { %v2291_v2 = vsub.f32 %v3618_v57, %v2289_v3  ;;  %v3097_v0 = vpack.c.bf16 %v2471_v63, %v2470_v62  ;;  %v2488_v3 = vld [vmem:[%s3405_s2 + $0xa0] sm:$0xff] }
 0x7f1   : > { %v2294_v6 = vmul.f32 %v2292_v1, %v2292_v1 }
 0x7f2   : > { %v2293_v4 = vmul.f32 %v2291_v2, %v2291_v2 }
 0x7f3   : > { %v2298_v7 = vsel %vm672_vm1, %v2294_v6, 0.0 }
 0x7f4   : > { %v2295_v5 = vsel %vm672_vm1, %v2293_v4, 0.0  ;;  %v2472_v4 = vld [vmem:[%s3405_s2 + $0x20] sm:$0xff] }
 0x7f5   : > { %2296 = vadd.xlane.f32.xlu0 %v2295_v5  ;;  %v2473_v5 = vld [vmem:[%s3405_s2 + $0x28] sm:$0xff] }
 0x7f6   : > { %v3101_v6 = vpack.c.bf16 %v2473_v5, %v2472_v4 }
 0x7f9   : > { %2299 = vadd.xlane.f32.xlu0 %v2298_v7  ;;  %v2490_v7 = vld [vmem:[%s3405_s2 + $0xb0] sm:$0xff] }
 0x7fa   : > { %v3103_v9 = vpack.c.bf16 %v2491_v8, %v2490_v7 }
 0x882   : > { %v2297_v36 = vpop.xlane.xlu0 %2296 }
 0x883   : > { %v2301_v37 = vmul.f32 0.015625, %v2297_v36  ;;  %v2499_v36 = vld [vmem:[%s3405_s2 + $0xf8] sm:$0xff] }
 0x885   : > { %v2303_v38 = vadd.f32 1e-05, %v2301_v37  ;;  %v3119_v37 = vpack.c.bf16 %v2499_v36, %v2498_v34 }
 0x886   : > { %v2300_v39 = vpop.xlane.xlu0 %2299 }
 0x887   : > { %3185 = vrsqrt.f32 %v2303_v38  ;;  %v2302_v40 = vmul.f32 0.015625, %v2300_v39  ;;  %v2482_v38 = vld [vmem:[%s3405_s2 + $0x70] sm:$0xff]  ;;  %v2483_v39 = vld [vmem:[%s3405_s2 + $0x78] sm:$0xff] }
 0x889   : > { %v2304_v41 = vadd.f32 1e-05, %v2302_v40  ;;  %v3121_v40 = vpack.c.bf16 %v2483_v39, %v2482_v38 }
 0x88b   : > { %3187 = vrsqrt.f32 %v2304_v41  ;;  %v2341_v41 = vld [vmem:[%s3399_s23] sm:$0x3] }
 0x891   : > { %v3186_v42 = vpop.eup %3185 }
 0x892   : > { %v2307_v44 = vmul.f32 %v3186_v42, %v2291_v2  ;;  %v2346_v42 = vrot.slane %v2341_v41, %v736_v59 }
 0x894   : > { %v2315_v46 = vmul.f32 %v2844_v43, %v2307_v44 }
 0x895   : > { %v3188_v47 = vpop.eup %3187 }
 0x896   : > { %v2323_v48 = vadd.f32 %v2845_v45, %v2315_v46  ;;  %v2308_v23 = vmul.f32 %v3188_v47, %v2292_v1  ;;  %v2489_v1 = vld [vmem:[%s3405_s2 + $0xa8] sm:$0xff] }
 0x897   : > { %v3099_v2 = vpack.c.bf16 %v2489_v1, %v2488_v3 }
 0x898   : > { %2846 = vmatmul.mubr.msk.f32.vlgmr.msra.gmra.mrb[18].mxu0 %vm672_vm1, %v2323_v48  ;;  %v2316_v21 = vmul.f32 %v2844_v43, %v2308_v23  ;;  %v2350_v43 = vrot.slane %v2341_v41, %v740_v16 }
 0x899   : > { %2429 = vmatprep.mubr.f32.mxu0 %v3247_v35  ;;  %v3095_v35 = vpack.c.bf16 %v2487_v61, %v2486_v60 }
 0x89a   : > { %v2324_v49 = vadd.f32 %v2845_v45, %v2316_v21 }
 0x89b   : > { %3096 = vmatprep.subr.bf16.mxu1 %v3095_v35 }
 0x89c   : > { %2847 = vmatmul.mubr.msk.f32.gmra.mrb[20].mxu0 %vm672_vm1, %v2324_v49  ;;  %3098 = vmatpush3.bf16.msra.mxu1 %v3097_v0 }
 0x89d   : > { %3100 = vmatprep.subr.bf16.mxu1 %v3099_v2 }
 0x8a0   : > { %3102 = vmatpush3.bf16.msra.mxu1 %v3101_v6 }
 0x8a1   : > { %3104 = vmatprep.subr.bf16.mxu1 %v3103_v9 }
 0x8a4   : > { %3106 = vmatpush3.bf16.msra.mxu1 %v3105_v12 }
 0x8a5   : > { %3108 = vmatprep.subr.bf16.mxu1 %v3107_v15 }
 0x8a8   : > { %3110 = vmatpush3.bf16.msra.mxu1 %v3109_v19 }
 0x8a9   : > { %3112 = vmatprep.subr.bf16.mxu1 %v3111_v24 }
 0x8ac   : > { %3114 = vmatpush3.bf16.msra.mxu1 %v3113_v27 }
 0x8ad   : > { %3116 = vmatprep.subr.bf16.mxu1 %v3115_v30 }
 0x8b0   : > { %3118 = vmatpush3.bf16.msra.mxu1 %v3117_v33 }
 0x8b1   : > { %3120 = vmatprep.subr.bf16.mxu1 %v3119_v37 }
 0x8b4   : > { %3122 = vmatpush3.bf16.msra.mxu1 %v3121_v40 }
 0x96b   : > { %v2425_v44 = vpop.f32.mrb[18].mxu0 }
 0x96c   : > { %v2426_v45 = vadd.f32 %v2425_v44, %v2346_v42  ;;  %v2427_v46 = vpop.f32.mrb[19].mxu0  ;;  %v2855_v44 = vld [vmem:[%s3778_s27] ss:$0 sm:$0xff] (!%p2853_p5) }
 0x96d   : > { %v2428_v47 = vadd.f32 %v2427_v46, %v2350_v43 }
 0x96e   : > { %v2848_v48 = vmul.f32 -1.702, %v2426_v45 }
 0x96f   : > { %v2849_v23 = vmul.f32 -1.702, %v2428_v47  ;;  %v2431_v21 = vpop.f32.mrb[20].mxu0 }
 0x970   : > { %v2444_v49 = vmul.f32 1.442695, %v2848_v48  ;;  %v2432_v50 = vadd.f32 %v2431_v21, %v2346_v42  ;;  %v2433_v51 = vpop.f32.mrb[21].mxu0  ;;  %v2854_v42 = vld [vmem:[%s3777_s3] ss:$0 sm:$0xff] (!%p2853_p5) }
 0x971   : > { %v2446_v52 = vmul.f32 1.442695, %v2849_v23  ;;  %v2434_v53 = vadd.f32 %v2433_v51, %v2350_v43 }
 0x972   : > { %3189 = vpow2.f32 %v2444_v49  ;;  %v2850_v54 = vmul.f32 -1.702, %v2432_v50 }
 0x973   : > { %3191 = vpow2.f32 %v2446_v52  ;;  %v2851_v55 = vmul.f32 -1.702, %v2434_v53 }
 0x974   : > { %v2448_v59 = vmul.f32 1.442695, %v2850_v54 }
 0x975   : > { %v2450_v60 = vmul.f32 1.442695, %v2851_v55 }
 0x976   : > { %3193 = vpow2.f32 %v2448_v59 }
 0x977   : > { %3195 = vpow2.f32 %v2450_v60 }
 0x97c   : > { %v3190_v58 = vpop.eup %3189 }
 0x97d   : > { %v3192_v16 = vpop.eup %3191  ;;  %v2452_v61 = vadd.f32 1.0, %v3190_v58 }
 0x97e   : > { %v2453_v35 = vadd.f32 1.0, %v3192_v16 }
 0x97f   : > { %3197 = vrcp.f32 %v2452_v61 }
 0x980   : > { %v3194_v62 = vpop.eup %3193  ;;  %3199 = vrcp.f32 %v2453_v35 }
 0x981   : > { %v3196_v63 = vpop.eup %3195  ;;  %v2454_v0 = vadd.f32 1.0, %v3194_v62 }
 0x982   : > { %v2455_v3 = vadd.f32 1.0, %v3196_v63 }
 0x983   : > { %3201 = vrcp.f32 %v2454_v0 }
 0x984   : > { %3203 = vrcp.f32 %v2455_v3 }
 0x989   : > { %v3198_v1 = vpop.eup %3197 }
 0x98a   : > { %v3200_v2 = vpop.eup %3199  ;;  %v2464_v5 = vmul.f32 %v3198_v1, %v2426_v45 }
 0x98b   : > { %v2465_v4 = vmul.f32 %v3200_v2, %v2428_v47 }
 0x98d   : > { %v3202_v6 = vpop.eup %3201  ;;  %2571 = vmatprep.mubr.f32.mxu1 %v2465_v4 }
 0x98e   : > { %v3204_v7 = vpop.eup %3203  ;;  %2572 = vmatmul.mubr.f32.vlgmr.msra.gmra.mrb[20].mxu1 %v2464_v5  ;;  %v2466_v9 = vmul.f32 %v3202_v6, %v2432_v50 }
 0x98f   : > { %v2467_v8 = vmul.f32 %v3204_v7, %v2434_v53 }
 0x991   : > { %2576 = vmatprep.mubr.f32.mxu1 %v2467_v8 }
 0x992   : > { %2577 = vmatmul.mubr.f32.gmra.mrb[22].mxu1 %v2466_v9 }
 0xa61   : > { %v2938_v10 = vpop.f32.mrb[20].mxu1 }
 0xa62   : > { %v2939_v12 = vpop.f32.mrb[21].mxu1 }
 0xa63   : > { %v2940_v13 = vadd.f32 %v2939_v12, %v2938_v10 }
 0xa65   : > { %v2574_v14 = vadd.f32 %v2940_v13, %v2852_v11  ;;  %v2941_v15 = vpop.f32.mrb[22].mxu1 }
 0xa66   : > { %v2942_v17 = vpop.f32.mrb[23].mxu1 }
 0xa67   : > { %v2582_v18 = vadd.f32 %v2574_v14, %v3618_v57  ;;  %v2943_v19 = vadd.f32 %v2942_v17, %v2941_v15  ;;  %2589 = sbr.rel (%p2853_p5) target bundleno = 2983 (0xba7), region = 88 }
 0xa69   : > { %2584 = vst.msk [vmem:[#allocation2] sm:$0xff] %vm672_vm1, %v2582_v18  ;;  %v2579_v20 = vadd.f32 %v2943_v19, %v2852_v11  ;;  %v2592_v24 = vsel (!%p2853_p5), %vm672_vm1, %v2582_v18, 0.0 }
 0xa6a   : > { %2593 = vadd.xlane.f32.xlu0 (!%p2853_p5), %v2592_v24 }
 0xa6b   : > { %v2583_v22 = vadd.f32 %v2579_v20, %v3615_v56 }
 0xa6d   : > { %2585 = vst.msk [vmem:[#allocation2 + $0x8] sm:$0xff] %vm672_vm1, %v2583_v22  ;;  %v2595_v25 = vsel (!%p2853_p5), %vm672_vm1, %v2583_v22, 0.0 }
 0xa6e   : > { %2596 = vadd.xlane.f32.xlu0 %v2595_v25 }
 0xaf7   : > { %v2594_v26 = vpop.xlane.xlu0 %2593 }
 0xaf8   : > { %v2598_v27 = vmul.f32 0.015625, %v2594_v26 }
 0xafa   : > { %v2600_v57 = vsub.f32 %v2582_v18, %v2598_v27 }
 0xafb   : > { %v2597_v28 = vpop.xlane.xlu0 %2596 }
 0xafc   : > { %v2599_v29 = vmul.f32 0.015625, %v2597_v28  ;;  %v2602_v30 = vmul.f32 %v2600_v57, %v2600_v57 }
 0xafe   : > { %v2601_v31 = vsub.f32 %v2583_v22, %v2599_v29  ;;  %v2604_v56 = vsel %vm672_vm1, %v2602_v30, 0.0 }
 0xaff   : > { %2605 = vadd.xlane.f32.xlu1 %v2604_v56 }
 0xb00   : > { %v2603_v32 = vmul.f32 %v2601_v31, %v2601_v31 }
 0xb02   : > { %v2607_v33 = vsel %vm672_vm1, %v2603_v32, 0.0 }
 0xb03   : > { %2608 = vadd.xlane.f32.xlu1 %v2607_v33 }
 0xb8c   : > { %v2606_v34 = vpop.xlane.xlu1 %2605 }
 0xb8d   : > { %v2610_v36 = vmul.f32 0.015625, %v2606_v34 }
 0xb8f   : > { %v2612_v37 = vadd.f32 1e-05, %v2610_v36 }
 0xb90   : > { %v2609_v38 = vpop.xlane.xlu1 %2608 }
 0xb91   : > { %3205 = vrsqrt.f32 %v2612_v37  ;;  %v2611_v39 = vmul.f32 0.015625, %v2609_v38 }
 0xb93   : > { %v2613_v40 = vadd.f32 1e-05, %v2611_v39 }
 0xb95   : > { %3207 = vrsqrt.f32 %v2613_v40 }
 0xb9b   : > { %v3206_v41 = vpop.eup %3205 }
 0xb9c   : > { %v2616_v43 = vmul.f32 %v3206_v41, %v2600_v57 }
 0xb9e   : > { %v2624_v45 = vmul.f32 %v2854_v42, %v2616_v43 }
 0xb9f   : > { %v3208_v46 = vpop.eup %3207 }
 0xba0   : > { %v2632_v47 = vadd.f32 %v2855_v44, %v2624_v45  ;;  %v2617_v48 = vmul.f32 %v3208_v46, %v2601_v31 }
 0xba2   : > { %2634 = vst.msk [vmem:[#allocation3] sm:$0xff] %vm672_vm1, %v2632_v47  ;;  %v2625_v23 = vmul.f32 %v2854_v42, %v2617_v48 }
 0xba4   : > { %v2633_v21 = vadd.f32 %v2855_v44, %v2625_v23 }
 0xba6   : > { %2635 = vst.msk [vmem:[#allocation3 + $0x8] sm:$0xff] %vm672_vm1, %v2633_v21 }
 0xba7 PF: > { %p3127_p6 = scmp.eq.s32.totalorder %s3345_s19, 11  ;;  %s3256_s28 = smov [#allocation3]  }
 0xba8   : > { %s2642_s30 = sshll.u32 %s3256_s28, 4  ;;  %s2643_s30 = int_to_ptr.vmem [resolvable:$true] %s2642_s30 }
 0xba9   : > { %s3209_s29 = scalar_lea.vmem %s2643_s30, 256  ;;  %p3216_p10 = scmp.lt.s32.totalorder %s2643_s30, %s2643_s30 }
 0xbaa   : > { %p3210_p7 = scmp.ne.s32.totalorder %s2643_s30, %s3209_s29  ;;  %p3217_p11 = scmp.lt.s32.totalorder %s3209_s29, %s3209_s29 }
 0xbac   : > { %p3211_p8 = pnand %p3210_p7, %p3127_p6  ;;  %p3218_p12 = por %p3217_p11, %p3216_p10 }
 0xbae   : > { %p3212_p9 = pneg %p3211_p8 }
 0xbb0   : > { %p3219_p13 = pnand %p3218_p12, %p3212_p9 }
 0xbb2   : > { %3222 = shalt.err (!%p3219_p13)
}
 0xbb3   : > { %s3779_s16 = sld [smem:[#allocation13_spill]] }
 0xbb9   : > { %s3223_s14 = scalar_lea.hbm %s3779_s16, 256 }
 0xbba   : > { %p3224_p0 = scmp.ne.s32.totalorder %s3779_s16, %s3223_s14  ;;  %p3229_p3 = scmp.lt.u32.totalorder %s3223_s14, %s3779_s16 }
 0xbbc   : > { %p3225_p1 = pnand %p3224_p0, %p3127_p6 }
 0xbbe   : > { %p3226_p2 = pneg %p3225_p1 }
 0xbc0   : > { %p3231_p4 = pnand %p3229_p3, %p3226_p2 }
 0xbc2   : > { %3234 = shalt.err (!%p3231_p4)
}
 0xbc3   : > { %s3257_s24 = smov 128   ;;  %s3258_s23 = smov 8  }
 0xbc4   : > { %3124 = dma.vmem_to_hbm [thread:$0]  (%p3127_p6), %s2643_s30, 256, %s3779_s16, [#allocation4], %s3257_s24, %s3257_s24, %s3258_s23  }
 0xbc5   : > { %3240 = dma.done.wait (%p3127_p6), [#allocation4], 256  }
 0xbc6   : > { %3242 = vsyncadd (%p3127_p6), [#allocation4], 4294967040 }
 0xbc7 PF: > { %s3780_s2 = sld [smem:[#allocation6_spill]] }
 0xbcd   : > { %s26_s18 = sadd.s32 1, %s3780_s2  }
 0xbce   : > { %p23_p5 = scmp.ge.s32.totalorder %s26_s18, 14  }
 0xbd0   :  { %25 = sbr.rel (!%p23_p5) target bundleno = 8 (0x8), region = 148 }
 0xbd7   :  { %2658 = vsyncpa [#allocation4], 1 }
 0xbd8   :  { %2660 = vsyncpa [#allocation4 + $0x1], 1 }

</bundles_post_ra>
